<compile_context>
chip_gen: v5e
topology: v5e:2x2
jax: 0.10.0
libtpu: 0.0.40
codegen_flags: <defaults>
</compile_context>

<pallas_src>
import numpy as np
import jax
import jax.numpy as jnp
from jax import lax
from jax.experimental import pallas as pl
from jax.experimental.pallas import tpu as pltpu

# Module hyper-parameters (BigVGAN defaults: up_ratio = down_ratio = 2, kernel_size = 12)
RATIO = 2
STRIDE = 2
K = 12
PAD_UP = K // RATIO - 1                                  # 5   (UpSample1d.pad)
PAD_LEFT_UP = PAD_UP * STRIDE + (K - STRIDE) // 2        # 15  (UpSample1d.pad_left)
PAD_RIGHT_UP = PAD_UP * STRIDE + (K - STRIDE + 1) // 2   # 15  (UpSample1d.pad_right)
PAD_L_DN = K // 2 - 1                                    # 5   (DownSample1d.pad_left)
PAD_R_DN = K // 2                                        # 6   (DownSample1d.pad_right)
EPS = 1e-9

NTAP = K // 2        # 6 polyphase taps per phase
HALO = 10            # lookahead rows of padded input needed past each L tile
HB = 16              # halo DMA block (multiple of 8 sublanes, >= HALO)

# rows of the packed per-channel parameter array
ROW_WE, ROW_WO, ROW_DE, ROW_DO = 0, 6, 12, 18
ROW_ALPHA, ROW_INV_ALPHA = 24, 25
PARAM_ROWS = 32


def _aa_snake_kernel(x_ref, halo_ref, w_ref, out_ref):
    """One (batch, L-tile, C-tile) block of upsample -> Snake -> downsample.

    x_ref    : (1, TL, TC)       rows [s0, s0+TL)       of the replicate-padded input
    halo_ref : (1, HB, TC)       rows [s0+TL, s0+TL+HB) of the same array (first HALO used)
    w_ref    : (PARAM_ROWS, TC)  packed polyphase taps + alpha + 1/(alpha+eps)
    out_ref  : (1, TL, TC)       final stride-2 down-conv outputs for this tile
    """
    lb = pl.program_id(1)
    n_lb = pl.num_programs(1)
    TL = out_ref.shape[1]
    TC = out_ref.shape[2]
    nr = TL + 5                                   # 2x-rate phase rows needed per tile

    # contiguous (TL + HALO, TC) slab of the padded input for this tile
    xl = jnp.concatenate([x_ref[0], halo_ref[0, :HALO, :]], axis=0)

    W = w_ref[...]                                # (PARAM_ROWS, TC)
    alpha = W[ROW_ALPHA:ROW_ALPHA + 1]            # (1, TC)
    inv_a = W[ROW_INV_ALPHA:ROW_INV_ALPHA + 1]    # (1, TC)  == 1/(alpha+eps)

    # --- polyphase up-conv (conv_transpose1d * ratio + crop), 6 taps per phase.
    #     Both phases consume the same shifted input windows xl[d : d+nr]. ---
    ue = jnp.zeros((nr, TC), jnp.float32)
    uo = jnp.zeros((nr, TC), jnp.float32)
    for d in range(NTAP):                         # static 6-tap loop
        seg = xl[d:d + nr, :]
        ue = ue + seg * W[ROW_WE + d:ROW_WE + d + 1]
        uo = uo + seg * W[ROW_WO + d:ROW_WO + d + 1]

    # --- Snake activation on both phases: v + sin(alpha*v)^2 / (alpha+eps) ---
    ae = ue + inv_a * jnp.square(jnp.sin(ue * alpha))
    ao = uo + inv_a * jnp.square(jnp.sin(uo * alpha))

    # --- replicate pad of the down-sampler, expressed as row fixes on the two
    #     phase streams; only the first / last L tile is affected ---
    r = lax.broadcasted_iota(jnp.int32, (nr, 1), 0)
    is_first = lb == 0
    is_last = lb == n_lb - 1
    ae_first = ae[2:3, :]                         # act[0]     (left replicate value)
    ao_last = ao[TL + 2:TL + 3, :]                # act[2L-1]  (right replicate value)
    ae = jnp.where(jnp.logical_and(is_first, r < 2), ae_first, ae)
    ao = jnp.where(jnp.logical_and(is_first, r < 3), ae_first, ao)
    ae = jnp.where(jnp.logical_and(is_last, r >= TL + 2), ao_last, ae)
    ao = jnp.where(jnp.logical_and(is_last, r >= TL + 3), ao_last, ao)

    # --- polyphase stride-2 down-conv: 6 taps on each phase per output sample ---
    acc = jnp.zeros((TL, TC), jnp.float32)
    for j in range(NTAP):
        acc = acc + ae[j:j + TL, :] * W[ROW_DE + j:ROW_DE + j + 1]
        acc = acc + ao[j:j + TL, :] * W[ROW_DO + j:ROW_DO + j + 1]
    out_ref[0, :, :] = acc.astype(out_ref.dtype)


def _pick_tl(L, max_tl=256):
    """Largest multiple of 16 that divides L and is <= max_tl."""
    best = None
    t = 16
    while t <= min(L, max_tl):
        if L % t == 0:
            best = t
        t += 16
    return best


def torch_activation1d(x_ncl, w_up, w_dn, alpha, *, tl=None):
    """x_ncl: (B, C, L) float32 (PyTorch NCL).  w_up, w_dn: (C, K).  alpha: (C,)."""
    B, C, L = x_ncl.shape
    # TODO(synk): L not a multiple of 16 needs a boundary-correct ragged last tile.
    assert L % 16 == 0, "L must be a multiple of 16"
    if tl is None:
        tl = _pick_tl(L)
    assert tl is not None and tl % HB == 0 and L % tl == 0
    n_lb = L // tl

    # channel (lane) blocking: lane-dense 128 blocks when C >= 128, full-C lanes otherwise
    if C >= 128:
        tc = 128
        cp = ((C + 127) // 128) * 128
    else:
        tc = C
        cp = C
    n_cb = cp // tc
    pc = cp - C

    # ---- glue: layout + replicate padding (plain JAX) ----
    x = jnp.transpose(x_ncl, (0, 2, 1)).astype(jnp.float32)               # (B, L, C)
    if pc:
        x = jnp.pad(x, ((0, 0), (0, 0), (0, pc)))
    # replicate pad: PAD_UP=5 rows on the left, HB - PAD_UP on the right so every
    # (main tile + 16-row halo tile) read stays in bounds; total length L + HB.
    xpad = jnp.concatenate(
        [jnp.broadcast_to(x[:, :1, :], (B, PAD_UP, cp)),
         x,
         jnp.broadcast_to(x[:, -1:, :], (B, HB - PAD_UP, cp))], axis=1)   # (B, L+HB, cp)

    # ---- glue: pack per-channel polyphase taps + Snake params into one array ----
    w_up_p = jnp.pad(w_up.astype(jnp.float32), ((0, pc), (0, 0)))
    w_dn_p = jnp.pad(w_dn.astype(jnp.float32), ((0, pc), (0, 0)))
    alpha_p = jnp.pad(alpha.astype(jnp.float32), (0, pc), constant_values=1.0)
    we = (RATIO * w_up_p[:, K - 1::-2]).T          # (6, cp) up taps, even 2x-rate phase
    wo = (RATIO * w_up_p[:, K - 2::-2]).T          # (6, cp) up taps, odd  2x-rate phase
    de = w_dn_p[:, 1::2].T                         # (6, cp) down taps applied to even phase
    do = w_dn_p[:, 0::2].T                         # (6, cp) down taps applied to odd phase
    params = jnp.zeros((PARAM_ROWS, cp), jnp.float32)
    params = params.at[ROW_WE:ROW_WE + NTAP].set(we)
    params = params.at[ROW_WO:ROW_WO + NTAP].set(wo)
    params = params.at[ROW_DE:ROW_DE + NTAP].set(de)
    params = params.at[ROW_DO:ROW_DO + NTAP].set(do)
    params = params.at[ROW_ALPHA].set(alpha_p)
    params = params.at[ROW_INV_ALPHA].set(1.0 / (alpha_p + EPS))

    halo_step = tl // HB
    out = pl.pallas_call(
        _aa_snake_kernel,
        grid=(B, n_lb, n_cb),
        in_specs=[
            pl.BlockSpec((1, tl, tc), lambda b, lb, cb: (b, lb, cb)),
            pl.BlockSpec((1, HB, tc), lambda b, lb, cb: (b, (lb + 1) * halo_step, cb)),
            pl.BlockSpec((PARAM_ROWS, tc), lambda b, lb, cb: (0, cb)),
        ],
        out_specs=pl.BlockSpec((1, tl, tc), lambda b, lb, cb: (b, lb, cb)),
        out_shape=jax.ShapeDtypeStruct((B, L, cp), jnp.float32),
        compiler_params=pltpu.CompilerParams(
            dimension_semantics=("parallel", "parallel", "parallel")),
    )(xpad, xpad, params)

    if pc:
        out = out[:, :, :C]
    return jnp.transpose(out, (0, 2, 1))                                   # (B, C, L)


# ---------------------------------------------------------------------------
# numpy reference of the exact PyTorch forward (for correctness check)
# ---------------------------------------------------------------------------
def _reference(x, w_up, w_dn, alpha):
    B, C, L = x.shape
    # UpSample1d: replicate pad, conv_transpose1d(stride, groups=C), *ratio, crop
    xp = np.concatenate([np.repeat(x[:, :, :1], PAD_UP, 2), x,
                         np.repeat(x[:, :, -1:], PAD_UP, 2)], axis=2).astype(np.float64)
    Lp = xp.shape[2]
    Lt = (Lp - 1) * STRIDE + K
    y = np.zeros((B, C, Lt), np.float64)
    for i in range(Lp):
        for k in range(K):
            y[:, :, i * STRIDE + k] += xp[:, :, i] * w_up[None, :, k]
    y = RATIO * y
    y = y[:, :, PAD_LEFT_UP:Lt - PAD_RIGHT_UP]
    # Snake activation
    a = alpha[None, :, None].astype(np.float64)
    y = y + (1.0 / (a + EPS)) * np.sin(y * a) ** 2
    # DownSample1d: replicate pad, conv1d(stride, groups=C)
    yp = np.concatenate([np.repeat(y[:, :, :1], PAD_L_DN, 2), y,
                         np.repeat(y[:, :, -1:], PAD_R_DN, 2)], axis=2)
    Lpd = yp.shape[2]
    Lo = (Lpd - K) // STRIDE + 1
    out = np.zeros((B, C, Lo), np.float64)
    for t in range(Lo):
        out[:, :, t] = np.sum(yp[:, :, t * STRIDE:t * STRIDE + K] * w_dn[None, :, :], axis=2)
    return out.astype(np.float32)


if __name__ == "__main__":
    def run_case(B, C, L, tl, key):
        k1, k2, k3, k4 = jax.random.split(key, 4)
        x = jax.random.normal(k1, (B, C, L), jnp.float32)
        w_up = 0.3 * jax.random.normal(k2, (C, K), jnp.float32)
        w_dn = 0.3 * jax.random.normal(k3, (C, K), jnp.float32)
        alpha = jax.random.uniform(k4, (C,), jnp.float32, minval=0.5, maxval=1.5)

        fn = jax.jit(lambda a, b, c, d: torch_activation1d(a, b, c, d, tl=tl))
        out = jax.block_until_ready(fn(x, w_up, w_dn, alpha))

        ref = _reference(np.asarray(x), np.asarray(w_up), np.asarray(w_dn), np.asarray(alpha))
        assert out.shape == (B, C, L), (out.shape, (B, C, L))
        err = float(np.max(np.abs(np.asarray(out) - ref)))
        assert np.allclose(np.asarray(out), ref, rtol=1e-3, atol=1e-3), err

    key = jax.random.PRNGKey(0)
    ka, kb = jax.random.split(key)
    run_case(B=2, C=4, L=32, tl=16, key=ka)     # small C (full-C lanes), 2 L tiles (edge fixes)
    run_case(B=1, C=192, L=48, tl=16, key=kb)   # C padded to 256 -> 2 lane blocks, 3 L tiles
    print("KERNEL_OK")
</pallas_src>

<mosaic_0001>
module attributes {stable_mosaic.version = 11 : i64} {
  func.func @_aa_snake_kernel(%arg0: i32, %arg1: i32, %arg2: i32, %arg3: memref<1x16x4xf32, #tpu.memory_space<vmem>>, %arg4: memref<1x16x4xf32, #tpu.memory_space<vmem>>, %arg5: memref<32x4xf32, #tpu.memory_space<vmem>>, %arg6: memref<1x16x4xf32, #tpu.memory_space<vmem>>) attributes {dimension_semantics = [#tpu.dimension_semantics<parallel>, #tpu.dimension_semantics<parallel>, #tpu.dimension_semantics<parallel>], iteration_bounds = array<i64: 2, 2, 1>, scalar_prefetch = 0 : i64, scratch_operands = 0 : i64, tpu.core_type = #tpu.core_type<tc>, window_params = [{transform_indices = @transform_0, window_bounds = array<i64: 1, 16, 4>}, {transform_indices = @transform_1, window_bounds = array<i64: 1, 16, 4>}, {transform_indices = @transform_2, window_bounds = array<i64: 32, 4>}, {transform_indices = @transform_3, window_bounds = array<i64: 1, 16, 4>}]} {
    %c0 = arith.constant 0 : index
    %c0_0 = arith.constant 0 : index
    %c0_1 = arith.constant 0 : index
    %0 = vector.load %arg3[%c0, %c0_0, %c0_1] : memref<1x16x4xf32, #tpu.memory_space<vmem>>, vector<1x16x4xf32>
    %1 = vector.shape_cast %0 : vector<1x16x4xf32> to vector<16x4xf32>
    %c0_2 = arith.constant 0 : index
    %c0_3 = arith.constant 0 : index
    %c0_4 = arith.constant 0 : index
    %2 = vector.load %arg4[%c0_2, %c0_3, %c0_4] : memref<1x16x4xf32, #tpu.memory_space<vmem>>, vector<1x10x4xf32>
    %3 = vector.shape_cast %2 : vector<1x10x4xf32> to vector<10x4xf32>
    %4 = tpu.concatenate %1, %3 in 0 : vector<16x4xf32>, vector<10x4xf32> -> vector<26x4xf32>
    %c0_5 = arith.constant 0 : index
    %c0_6 = arith.constant 0 : index
    %5 = vector.load %arg5[%c0_5, %c0_6] : memref<32x4xf32, #tpu.memory_space<vmem>>, vector<32x4xf32>
    %6 = vector.extract_strided_slice %5 {offsets = [24, 0], sizes = [1, 4], strides = [1, 1]} : vector<32x4xf32> to vector<1x4xf32>
    %7 = vector.extract_strided_slice %5 {offsets = [25, 0], sizes = [1, 4], strides = [1, 1]} : vector<32x4xf32> to vector<1x4xf32>
    %cst = arith.constant 0.000000e+00 : f32
    %8 = vector.broadcast %cst : f32 to vector<21x4xf32>
    %cst_7 = arith.constant 0.000000e+00 : f32
    %9 = vector.broadcast %cst_7 : f32 to vector<21x4xf32>
    %10 = vector.extract_strided_slice %4 {offsets = [0, 0], sizes = [21, 4], strides = [1, 1]} : vector<26x4xf32> to vector<21x4xf32>
    %11 = vector.extract_strided_slice %5 {offsets = [0, 0], sizes = [1, 4], strides = [1, 1]} : vector<32x4xf32> to vector<1x4xf32>
    %12 = vector.broadcast %11 : vector<1x4xf32> to vector<21x4xf32>
    %13 = arith.mulf %10, %12 : vector<21x4xf32>
    %14 = arith.addf %8, %13 : vector<21x4xf32>
    %15 = vector.extract_strided_slice %5 {offsets = [6, 0], sizes = [1, 4], strides = [1, 1]} : vector<32x4xf32> to vector<1x4xf32>
    %16 = vector.broadcast %15 : vector<1x4xf32> to vector<21x4xf32>
    %17 = arith.mulf %10, %16 : vector<21x4xf32>
    %18 = arith.addf %9, %17 : vector<21x4xf32>
    %19 = vector.extract_strided_slice %4 {offsets = [1, 0], sizes = [21, 4], strides = [1, 1]} : vector<26x4xf32> to vector<21x4xf32>
    %20 = vector.extract_strided_slice %5 {offsets = [1, 0], sizes = [1, 4], strides = [1, 1]} : vector<32x4xf32> to vector<1x4xf32>
    %21 = vector.broadcast %20 : vector<1x4xf32> to vector<21x4xf32>
    %22 = arith.mulf %19, %21 : vector<21x4xf32>
    %23 = arith.addf %14, %22 : vector<21x4xf32>
    %24 = vector.extract_strided_slice %5 {offsets = [7, 0], sizes = [1, 4], strides = [1, 1]} : vector<32x4xf32> to vector<1x4xf32>
    %25 = vector.broadcast %24 : vector<1x4xf32> to vector<21x4xf32>
    %26 = arith.mulf %19, %25 : vector<21x4xf32>
    %27 = arith.addf %18, %26 : vector<21x4xf32>
    %28 = vector.extract_strided_slice %4 {offsets = [2, 0], sizes = [21, 4], strides = [1, 1]} : vector<26x4xf32> to vector<21x4xf32>
    %29 = vector.extract_strided_slice %5 {offsets = [2, 0], sizes = [1, 4], strides = [1, 1]} : vector<32x4xf32> to vector<1x4xf32>
    %30 = vector.broadcast %29 : vector<1x4xf32> to vector<21x4xf32>
    %31 = arith.mulf %28, %30 : vector<21x4xf32>
    %32 = arith.addf %23, %31 : vector<21x4xf32>
    %33 = vector.extract_strided_slice %5 {offsets = [8, 0], sizes = [1, 4], strides = [1, 1]} : vector<32x4xf32> to vector<1x4xf32>
    %34 = vector.broadcast %33 : vector<1x4xf32> to vector<21x4xf32>
    %35 = arith.mulf %28, %34 : vector<21x4xf32>
    %36 = arith.addf %27, %35 : vector<21x4xf32>
    %37 = vector.extract_strided_slice %4 {offsets = [3, 0], sizes = [21, 4], strides = [1, 1]} : vector<26x4xf32> to vector<21x4xf32>
    %38 = vector.extract_strided_slice %5 {offsets = [3, 0], sizes = [1, 4], strides = [1, 1]} : vector<32x4xf32> to vector<1x4xf32>
    %39 = vector.broadcast %38 : vector<1x4xf32> to vector<21x4xf32>
    %40 = arith.mulf %37, %39 : vector<21x4xf32>
    %41 = arith.addf %32, %40 : vector<21x4xf32>
    %42 = vector.extract_strided_slice %5 {offsets = [9, 0], sizes = [1, 4], strides = [1, 1]} : vector<32x4xf32> to vector<1x4xf32>
    %43 = vector.broadcast %42 : vector<1x4xf32> to vector<21x4xf32>
    %44 = arith.mulf %37, %43 : vector<21x4xf32>
    %45 = arith.addf %36, %44 : vector<21x4xf32>
    %46 = vector.extract_strided_slice %4 {offsets = [4, 0], sizes = [21, 4], strides = [1, 1]} : vector<26x4xf32> to vector<21x4xf32>
    %47 = vector.extract_strided_slice %5 {offsets = [4, 0], sizes = [1, 4], strides = [1, 1]} : vector<32x4xf32> to vector<1x4xf32>
    %48 = vector.broadcast %47 : vector<1x4xf32> to vector<21x4xf32>
    %49 = arith.mulf %46, %48 : vector<21x4xf32>
    %50 = arith.addf %41, %49 : vector<21x4xf32>
    %51 = vector.extract_strided_slice %5 {offsets = [10, 0], sizes = [1, 4], strides = [1, 1]} : vector<32x4xf32> to vector<1x4xf32>
    %52 = vector.broadcast %51 : vector<1x4xf32> to vector<21x4xf32>
    %53 = arith.mulf %46, %52 : vector<21x4xf32>
    %54 = arith.addf %45, %53 : vector<21x4xf32>
    %55 = vector.extract_strided_slice %4 {offsets = [5, 0], sizes = [21, 4], strides = [1, 1]} : vector<26x4xf32> to vector<21x4xf32>
    %56 = vector.extract_strided_slice %5 {offsets = [5, 0], sizes = [1, 4], strides = [1, 1]} : vector<32x4xf32> to vector<1x4xf32>
    %57 = vector.broadcast %56 : vector<1x4xf32> to vector<21x4xf32>
    %58 = arith.mulf %55, %57 : vector<21x4xf32>
    %59 = arith.addf %50, %58 : vector<21x4xf32>
    %60 = vector.extract_strided_slice %5 {offsets = [11, 0], sizes = [1, 4], strides = [1, 1]} : vector<32x4xf32> to vector<1x4xf32>
    %61 = vector.broadcast %60 : vector<1x4xf32> to vector<21x4xf32>
    %62 = arith.mulf %55, %61 : vector<21x4xf32>
    %63 = arith.addf %54, %62 : vector<21x4xf32>
    %64 = vector.broadcast %6 : vector<1x4xf32> to vector<21x4xf32>
    %65 = arith.mulf %59, %64 : vector<21x4xf32>
    %66 = math.sin %65 : vector<21x4xf32>
    %67 = arith.mulf %66, %66 : vector<21x4xf32>
    %68 = vector.broadcast %7 : vector<1x4xf32> to vector<21x4xf32>
    %69 = arith.mulf %68, %67 : vector<21x4xf32>
    %70 = arith.addf %59, %69 : vector<21x4xf32>
    %71 = vector.broadcast %6 : vector<1x4xf32> to vector<21x4xf32>
    %72 = arith.mulf %63, %71 : vector<21x4xf32>
    %73 = math.sin %72 : vector<21x4xf32>
    %74 = arith.mulf %73, %73 : vector<21x4xf32>
    %75 = vector.broadcast %7 : vector<1x4xf32> to vector<21x4xf32>
    %76 = arith.mulf %75, %74 : vector<21x4xf32>
    %77 = arith.addf %63, %76 : vector<21x4xf32>
    %78 = tpu.iota {dimensions = array<i32: 0>} : vector<21x1xi32>
    %c0_i32 = arith.constant 0 : i32
    %79 = arith.cmpi eq, %arg1, %c0_i32 : i32
    %c1_i32 = arith.constant 1 : i32
    %80 = arith.cmpi eq, %arg1, %c1_i32 : i32
    %81 = vector.extract_strided_slice %70 {offsets = [2, 0], sizes = [1, 4], strides = [1, 1]} : vector<21x4xf32> to vector<1x4xf32>
    %82 = vector.extract_strided_slice %77 {offsets = [18, 0], sizes = [1, 4], strides = [1, 1]} : vector<21x4xf32> to vector<1x4xf32>
    %c2_i32 = arith.constant 2 : i32
    %83 = vector.broadcast %c2_i32 : i32 to vector<21x1xi32>
    %84 = arith.cmpi slt, %78, %83 : vector<21x1xi32>
    %85 = vector.broadcast %79 : i1 to vector<21x1xi1>
    %86 = arith.andi %85, %84 : vector<21x1xi1>
    %87 = vector.shape_cast %86 : vector<21x1xi1> to vector<21x1xi1>
    %88 = vector.broadcast %87 : vector<21x1xi1> to vector<21x4xi1>
    %89 = vector.shape_cast %81 : vector<1x4xf32> to vector<1x4xf32>
    %90 = vector.broadcast %89 : vector<1x4xf32> to vector<21x4xf32>
    %91 = arith.select %88, %90, %70 : vector<21x4xi1>, vector<21x4xf32>
    %c3_i32 = arith.constant 3 : i32
    %92 = vector.broadcast %c3_i32 : i32 to vector<21x1xi32>
    %93 = arith.cmpi slt, %78, %92 : vector<21x1xi32>
    %94 = vector.broadcast %79 : i1 to vector<21x1xi1>
    %95 = arith.andi %94, %93 : vector<21x1xi1>
    %96 = vector.shape_cast %95 : vector<21x1xi1> to vector<21x1xi1>
    %97 = vector.broadcast %96 : vector<21x1xi1> to vector<21x4xi1>
    %98 = vector.shape_cast %81 : vector<1x4xf32> to vector<1x4xf32>
    %99 = vector.broadcast %98 : vector<1x4xf32> to vector<21x4xf32>
    %100 = arith.select %97, %99, %77 : vector<21x4xi1>, vector<21x4xf32>
    %c18_i32 = arith.constant 18 : i32
    %101 = vector.broadcast %c18_i32 : i32 to vector<21x1xi32>
    %102 = arith.cmpi sge, %78, %101 : vector<21x1xi32>
    %103 = vector.broadcast %80 : i1 to vector<21x1xi1>
    %104 = arith.andi %103, %102 : vector<21x1xi1>
    %105 = vector.shape_cast %104 : vector<21x1xi1> to vector<21x1xi1>
    %106 = vector.broadcast %105 : vector<21x1xi1> to vector<21x4xi1>
    %107 = vector.shape_cast %82 : vector<1x4xf32> to vector<1x4xf32>
    %108 = vector.broadcast %107 : vector<1x4xf32> to vector<21x4xf32>
    %109 = arith.select %106, %108, %91 : vector<21x4xi1>, vector<21x4xf32>
    %c19_i32 = arith.constant 19 : i32
    %110 = vector.broadcast %c19_i32 : i32 to vector<21x1xi32>
    %111 = arith.cmpi sge, %78, %110 : vector<21x1xi32>
    %112 = vector.broadcast %80 : i1 to vector<21x1xi1>
    %113 = arith.andi %112, %111 : vector<21x1xi1>
    %114 = vector.shape_cast %113 : vector<21x1xi1> to vector<21x1xi1>
    %115 = vector.broadcast %114 : vector<21x1xi1> to vector<21x4xi1>
    %116 = vector.shape_cast %82 : vector<1x4xf32> to vector<1x4xf32>
    %117 = vector.broadcast %116 : vector<1x4xf32> to vector<21x4xf32>
    %118 = arith.select %115, %117, %100 : vector<21x4xi1>, vector<21x4xf32>
    %cst_8 = arith.constant 0.000000e+00 : f32
    %119 = vector.broadcast %cst_8 : f32 to vector<16x4xf32>
    %120 = vector.extract_strided_slice %109 {offsets = [0, 0], sizes = [16, 4], strides = [1, 1]} : vector<21x4xf32> to vector<16x4xf32>
    %121 = vector.extract_strided_slice %5 {offsets = [12, 0], sizes = [1, 4], strides = [1, 1]} : vector<32x4xf32> to vector<1x4xf32>
    %122 = vector.broadcast %121 : vector<1x4xf32> to vector<16x4xf32>
    %123 = arith.mulf %120, %122 : vector<16x4xf32>
    %124 = arith.addf %119, %123 : vector<16x4xf32>
    %125 = vector.extract_strided_slice %118 {offsets = [0, 0], sizes = [16, 4], strides = [1, 1]} : vector<21x4xf32> to vector<16x4xf32>
    %126 = vector.extract_strided_slice %5 {offsets = [18, 0], sizes = [1, 4], strides = [1, 1]} : vector<32x4xf32> to vector<1x4xf32>
    %127 = vector.broadcast %126 : vector<1x4xf32> to vector<16x4xf32>
    %128 = arith.mulf %125, %127 : vector<16x4xf32>
    %129 = arith.addf %124, %128 : vector<16x4xf32>
    %130 = vector.extract_strided_slice %109 {offsets = [1, 0], sizes = [16, 4], strides = [1, 1]} : vector<21x4xf32> to vector<16x4xf32>
    %131 = vector.extract_strided_slice %5 {offsets = [13, 0], sizes = [1, 4], strides = [1, 1]} : vector<32x4xf32> to vector<1x4xf32>
    %132 = vector.broadcast %131 : vector<1x4xf32> to vector<16x4xf32>
    %133 = arith.mulf %130, %132 : vector<16x4xf32>
    %134 = arith.addf %129, %133 : vector<16x4xf32>
    %135 = vector.extract_strided_slice %118 {offsets = [1, 0], sizes = [16, 4], strides = [1, 1]} : vector<21x4xf32> to vector<16x4xf32>
    %136 = vector.extract_strided_slice %5 {offsets = [19, 0], sizes = [1, 4], strides = [1, 1]} : vector<32x4xf32> to vector<1x4xf32>
    %137 = vector.broadcast %136 : vector<1x4xf32> to vector<16x4xf32>
    %138 = arith.mulf %135, %137 : vector<16x4xf32>
    %139 = arith.addf %134, %138 : vector<16x4xf32>
    %140 = vector.extract_strided_slice %109 {offsets = [2, 0], sizes = [16, 4], strides = [1, 1]} : vector<21x4xf32> to vector<16x4xf32>
    %141 = vector.extract_strided_slice %5 {offsets = [14, 0], sizes = [1, 4], strides = [1, 1]} : vector<32x4xf32> to vector<1x4xf32>
    %142 = vector.broadcast %141 : vector<1x4xf32> to vector<16x4xf32>
    %143 = arith.mulf %140, %142 : vector<16x4xf32>
    %144 = arith.addf %139, %143 : vector<16x4xf32>
    %145 = vector.extract_strided_slice %118 {offsets = [2, 0], sizes = [16, 4], strides = [1, 1]} : vector<21x4xf32> to vector<16x4xf32>
    %146 = vector.extract_strided_slice %5 {offsets = [20, 0], sizes = [1, 4], strides = [1, 1]} : vector<32x4xf32> to vector<1x4xf32>
    %147 = vector.broadcast %146 : vector<1x4xf32> to vector<16x4xf32>
    %148 = arith.mulf %145, %147 : vector<16x4xf32>
    %149 = arith.addf %144, %148 : vector<16x4xf32>
    %150 = vector.extract_strided_slice %109 {offsets = [3, 0], sizes = [16, 4], strides = [1, 1]} : vector<21x4xf32> to vector<16x4xf32>
    %151 = vector.extract_strided_slice %5 {offsets = [15, 0], sizes = [1, 4], strides = [1, 1]} : vector<32x4xf32> to vector<1x4xf32>
    %152 = vector.broadcast %151 : vector<1x4xf32> to vector<16x4xf32>
    %153 = arith.mulf %150, %152 : vector<16x4xf32>
    %154 = arith.addf %149, %153 : vector<16x4xf32>
    %155 = vector.extract_strided_slice %118 {offsets = [3, 0], sizes = [16, 4], strides = [1, 1]} : vector<21x4xf32> to vector<16x4xf32>
    %156 = vector.extract_strided_slice %5 {offsets = [21, 0], sizes = [1, 4], strides = [1, 1]} : vector<32x4xf32> to vector<1x4xf32>
    %157 = vector.broadcast %156 : vector<1x4xf32> to vector<16x4xf32>
    %158 = arith.mulf %155, %157 : vector<16x4xf32>
    %159 = arith.addf %154, %158 : vector<16x4xf32>
    %160 = vector.extract_strided_slice %109 {offsets = [4, 0], sizes = [16, 4], strides = [1, 1]} : vector<21x4xf32> to vector<16x4xf32>
    %161 = vector.extract_strided_slice %5 {offsets = [16, 0], sizes = [1, 4], strides = [1, 1]} : vector<32x4xf32> to vector<1x4xf32>
    %162 = vector.broadcast %161 : vector<1x4xf32> to vector<16x4xf32>
    %163 = arith.mulf %160, %162 : vector<16x4xf32>
    %164 = arith.addf %159, %163 : vector<16x4xf32>
    %165 = vector.extract_strided_slice %118 {offsets = [4, 0], sizes = [16, 4], strides = [1, 1]} : vector<21x4xf32> to vector<16x4xf32>
    %166 = vector.extract_strided_slice %5 {offsets = [22, 0], sizes = [1, 4], strides = [1, 1]} : vector<32x4xf32> to vector<1x4xf32>
    %167 = vector.broadcast %166 : vector<1x4xf32> to vector<16x4xf32>
    %168 = arith.mulf %165, %167 : vector<16x4xf32>
    %169 = arith.addf %164, %168 : vector<16x4xf32>
    %170 = vector.extract_strided_slice %109 {offsets = [5, 0], sizes = [16, 4], strides = [1, 1]} : vector<21x4xf32> to vector<16x4xf32>
    %171 = vector.extract_strided_slice %5 {offsets = [17, 0], sizes = [1, 4], strides = [1, 1]} : vector<32x4xf32> to vector<1x4xf32>
    %172 = vector.broadcast %171 : vector<1x4xf32> to vector<16x4xf32>
    %173 = arith.mulf %170, %172 : vector<16x4xf32>
    %174 = arith.addf %169, %173 : vector<16x4xf32>
    %175 = vector.extract_strided_slice %118 {offsets = [5, 0], sizes = [16, 4], strides = [1, 1]} : vector<21x4xf32> to vector<16x4xf32>
    %176 = vector.extract_strided_slice %5 {offsets = [23, 0], sizes = [1, 4], strides = [1, 1]} : vector<32x4xf32> to vector<1x4xf32>
    %177 = vector.broadcast %176 : vector<1x4xf32> to vector<16x4xf32>
    %178 = arith.mulf %175, %177 : vector<16x4xf32>
    %179 = arith.addf %174, %178 : vector<16x4xf32>
    %c0_9 = arith.constant 0 : index
    %c0_10 = arith.constant 0 : index
    %c0_11 = arith.constant 0 : index
    %180 = vector.load %arg6[%c0_9, %c0_10, %c0_11] : memref<1x16x4xf32, #tpu.memory_space<vmem>>, vector<1x16x4xf32>
    %181 = vector.shape_cast %180 : vector<1x16x4xf32> to vector<16x4xf32>
    %182 = vector.shape_cast %179 : vector<16x4xf32> to vector<1x16x4xf32>
    tpu.vector_store %arg6[%c0_9, %c0_10, %c0_11], %182 {strides = array<i32>} : memref<1x16x4xf32, #tpu.memory_space<vmem>>, vector<1x16x4xf32>,
    return
  }
  func.func @transform_0(%arg0: i32, %arg1: i32, %arg2: i32) -> (i32, i32, i32) {
    %c0_i32 = arith.constant 0 : i32
    return %arg0, %arg1, %arg2 : i32, i32, i32
  }
  func.func @transform_1(%arg0: i32, %arg1: i32, %arg2: i32) -> (i32, i32, i32) {
    %c1_i32 = arith.constant 1 : i32
    %0 = arith.addi %arg1, %c1_i32 : i32
    %c1_i32_0 = arith.constant 1 : i32
    %1 = arith.muli %0, %c1_i32_0 : i32
    %c0_i32 = arith.constant 0 : i32
    return %arg0, %1, %arg2 : i32, i32, i32
  }
  func.func @transform_2(%arg0: i32, %arg1: i32, %arg2: i32) -> (i32, i32) {
    %c0_i32 = arith.constant 0 : i32
    %c0_i32_0 = arith.constant 0 : i32
    return %c0_i32, %arg2 : i32, i32
  }
  func.func @transform_3(%arg0: i32, %arg1: i32, %arg2: i32) -> (i32, i32, i32) {
    %c0_i32 = arith.constant 0 : i32
    return %arg0, %arg1, %arg2 : i32, i32, i32
  }
}

</mosaic_0001>

<bundles_post_ra>
// kernel: _lambda_.1
= control target key start
LH: loop header
LB: loop body
LE: loop exit
PB: predicated region body
PF: predicated region fallthrough
CT: control target
= control target key end

     0   :  { %s2027_s12 = smov 0   ;;  %s2029_s13 = smov 0   ;;  %s3418_s0 = inlined_call_operand.vmem [shape: f32[2,48,4], index: 0, kind: input, shape index: {}, may-alias: {0,1}]   ;;  %s3419_s1 = inlined_call_operand.vmem [shape: f32[2,48,4], index: 1, kind: input, shape index: {}, may-alias: {0,1}]   ;;  %s3420_s2 = inlined_call_operand.vmem [shape: f32[32,4], index: 2, kind: input, shape index: {}]   ;;  %s3421_s3 = inlined_call_operand.vmem [shape: f32[2,32,4], index: 3, kind: output, shape index: {}]  }
   0x1   :  { %s2031_s14 = smov 0   ;;  %s2033_s15 = smov 0  }
   0x2   :  { %s2035_s16 = smov 0  }
   0x3 LB: > { %s28_s17 = sadd.s32 1, %s1990_s14  ;;  %s32_s18 = sadd.s32 1, %s1994_s15  ;;  %s1998_s16 = sphi %s2035_s16, %s13_s16   ;;  %s1994_s15 = sphi %s2033_s15, %s3517_s15   ;;  %s1990_s14 = sphi %s2031_s14, %s3516_s14   ;;  %s1986_s13 = sphi %s2029_s13, %s3515_s13   ;;  %s1982_s12 = sphi %s2027_s12, %s3514_s12  }
   0x4   : > { %p30_p0 = scmp.ge.s32.totalorder %s28_s17, 2  ;;  %p1880_p1 = scmp.ge.s32.totalorder %s1998_s16, 1 }
   0x5   : > { %p207_p2 = scmp.lt.s32.totalorder %s1998_s16, 5 }
   0x6   : > { %s3519_s17 = smov (%p30_p0, %s28_s17), 0  ;;  %s3521_s18 = smov (!%p30_p0, %s32_s18), %s1994_s15 }
   0x7   : > { %p208_p3 = pnand %p1880_p1, %p207_p2  ;;  %p34_p4 = scmp.ge.s32.totalorder %s3521_s18, 2 }
   0x9   : > { %s3523_s18 = smov (%p34_p4, %s3521_s18), 0  ;;  %211 = sbr.rel (%p208_p3) target bundleno = 353 (0x161), region = 32 }
   0xe   : > { %s1881_s19 = sshll.u32 %s1982_s12, 1  ;;  %p263_p5 = scmp.lt.s32.totalorder %s1986_s13, 1  ;;  %v2063_v0 = vld [vmem:[%s3420_s2] sm:$0xff]  ;;  %vm336_vm0 = vcmask 1046528   ;;  %vm373_vm1 = vcmask 1045504   ;;  %vm410_vm2 = vcmask 1044480  }
   0xf   : > { %p265_p6 = scmp.lt.s32.totalorder %s1881_s19, 5  ;;  %s1909_s20 = sadd.s32 2, %s1881_s19  ;;  %v329_v1 = vperm.slane %v2063_v0, 1  ;;  %v366_v4 = vperm.slane %v2063_v0, 2  ;;  %v315_v8 = vperm.slane %v2063_v0, 0  ;;  %v403_v10 = vperm.slane %v2063_v0, 3 }
  0x10   : > { %s3525_s13 = smov (!%p263_p5, %s1986_s13), 1  ;;  %p279_p7 = scmp.lt.s32.totalorder %s1909_s20, 5  ;;  %v440_v26 = vperm.slane %v2063_v0, 4  ;;  %vm3456_vm3 = vcmask 1043456   ;;  %v485_v49 = vperm.slane %v2063_v0, 5  ;;  %vm3455_vm4 = vcmask 1042432  }
  0x11   : > { %s266_s21 = scalar_select %p265_p6, %s1881_s19, 5 }
  0x12   : > { %s1910_s22 = smul.u32 6, %s3525_s13  ;;  %p297_p8 = scmp.lt.s32.totalorder %s1881_s19, 3 }
  0x13   : > { %s1886_s30 = sshll.u32 %s3525_s13, 2  ;;  %s3527_s20 = smov (!%p279_p7, %s1909_s20), 5 }
  0x14   : > { %s271_s25 = sadd.s32 %s1910_s22, %s266_s21  ;;  %s3529_s19 = smov (!%p297_p8, %s1881_s19), 3 }
  0x15   : > { %s1882_s26 = sshll.u32 %s271_s25, 3  ;;  %s285_s4 = sadd.s32 %s1910_s22, %s3527_s20 }
  0x16   : > { %s273_s29 = scalar_lea.vmem %s3418_s0, %s1882_s26  ;;  %s1884_s5 = sshll.u32 %s285_s4, 3 }
  0x17   : > { %v2069_v2 = vld [vmem:[%s273_s29] sm:$0xff]  ;;  %v2071_v3 = vld [vmem:[%s273_s29 + $0x8] sm:$0xff]  ;;  %s2076_s6 = sadd.s32 %s1886_s30, %s3529_s19  ;;  %s2081_s9 = scalar_lea.vmem %s3419_s1, %s1884_s5 }
  0x18   : > { %v330_v5 = vmul.f32 %v329_v1, %v2069_v2  ;;  %v331_v6 = vmul.f32 %v329_v1, %v2071_v3  ;;  %v2084_v7 = vld [vmem:[%s2081_s9] sm:$0xff]  ;;  %v367_v9 = vmul.f32 %v366_v4, %v2069_v2  ;;  %v368_v14 = vmul.f32 %v366_v4, %v2071_v3  ;;  %v2107_v40 = vld [vmem:[%s2081_s9 + $0x8] sm:$0x3]  ;;  %p1490_p9 = scmp.eq.s32.totalorder %s1982_s12, 0  ;;  %p1491_p10 = scmp.eq.s32.totalorder %s1982_s12, 1 }
  0x19   : > { %v332_v11 = vmul.f32 %v329_v1, %v2084_v7  ;;  %v369_v15 = vmul.f32 %v366_v4, %v2084_v7  ;;  %v316_v17 = vmul.f32 %v315_v8, %v2069_v2  ;;  %v317_v18 = vmul.f32 %v315_v8, %v2071_v3  ;;  %s1887_s12 = sshll.u32 %s2076_s6, 3 }
  0x1a   : > { %v337_v12 = vrot.slane %v330_v5, 1  ;;  %v338_v13 = vrot.slane %v331_v6, 1  ;;  %v374_v19 = vrot.slane %v367_v9, 2  ;;  %v375_v21 = vrot.slane %v368_v14, 2  ;;  %s1495_s22 = scalar_select %p1490_p9, 1, 0 }
  0x1b   : > { %v340_v16 = vrot.slane %v332_v11, 1  ;;  %v404_v22 = vmul.f32 %v403_v10, %v2069_v2  ;;  %v405_v23 = vmul.f32 %v403_v10, %v2071_v3  ;;  %v377_v25 = vrot.slane %v369_v15, 2  ;;  %s3295_s27 = scalar_select %p1491_p10, 1, 0 }
  0x1c   : > { %v339_v20 = vsel %vm336_vm0, %v337_v12, %v338_v13  ;;  %v318_v27 = vmul.f32 %v315_v8, %v2084_v7  ;;  %v406_v29 = vmul.f32 %v403_v10, %v2084_v7  ;;  %v376_v31 = vsel %vm373_vm1, %v374_v19, %v375_v21  ;;  %v314_v8 = vld [vmem:[%s3420_s2 + $0x18] sm:$0xff]  ;;  %s3353_s30 = scalar_lea.vmem %s3421_s3, %s1887_s12 }
  0x1d   : > { %v341_v24 = vsel %vm336_vm0, %v338_v13, %v340_v16  ;;  %v345_v28 = vadd.f32 %v339_v20, %v316_v17  ;;  %v411_v32 = vrot.slane %v404_v22, 3  ;;  %v412_v33 = vrot.slane %v405_v23, 3 }
  0x1e   : > { %v346_v30 = vadd.f32 %v341_v24, %v317_v18  ;;  %v378_v34 = vsel %vm373_vm1, %v375_v21, %v377_v25  ;;  %v414_v35 = vrot.slane %v406_v29, 3  ;;  %v441_v36 = vmul.f32 %v440_v26, %v2069_v2 }
  0x1f   : > { %v442_v37 = vmul.f32 %v440_v26, %v2071_v3  ;;  %v443_v38 = vmul.f32 %v440_v26, %v2084_v7  ;;  %v382_v39 = vadd.f32 %v376_v31, %v345_v28  ;;  %v347_v41 = vadd.f32 %v340_v16, %v318_v27 }
  0x20   : > { %v383_v42 = vadd.f32 %v378_v34, %v346_v30  ;;  %v413_v43 = vsel %vm410_vm2, %v411_v32, %v412_v33  ;;  %v450_v44 = vrot.slane %v441_v36, 4  ;;  %v415_v45 = vsel %vm410_vm2, %v412_v33, %v414_v35 }
  0x21   : > { %v444_v46 = vmul.f32 %v440_v26, %v2107_v40  ;;  %v451_v47 = vrot.slane %v442_v37, 4  ;;  %v453_v48 = vrot.slane %v443_v38, 4  ;;  %v419_v50 = vadd.f32 %v413_v43, %v382_v39 }
  0x22   : > { %v384_v51 = vadd.f32 %v377_v25, %v347_v41  ;;  %v420_v52 = vadd.f32 %v415_v45, %v383_v42  ;;  %v486_v56 = vmul.f32 %v485_v49, %v2069_v2  ;;  %v487_v57 = vmul.f32 %v485_v49, %v2071_v3 }
  0x23   : > { %v452_v53 = vsel %vm3456_vm3, %v450_v44, %v451_v47  ;;  %v454_v54 = vsel %vm3456_vm3, %v451_v47, %v453_v48  ;;  %v455_v55 = vrot.slane %v444_v46, 4  ;;  %v488_v58 = vmul.f32 %v485_v49, %v2084_v7 }
  0x24   : > { %v460_v59 = vadd.f32 %v452_v53, %v419_v50  ;;  %v489_v60 = vmul.f32 %v485_v49, %v2107_v40  ;;  %v421_v61 = vadd.f32 %v414_v35, %v384_v51  ;;  %v461_v62 = vadd.f32 %v454_v54, %v420_v52 }
  0x25   : > { %v495_v63 = vrot.slane %v486_v56, 5  ;;  %v496_v1 = vrot.slane %v487_v57, 5  ;;  %v456_v4 = vsel %vm3456_vm3, %v453_v48, %v455_v55  ;;  %v498_v5 = vrot.slane %v488_v58, 5 }
  0x26   : > { %v500_v6 = vrot.slane %v489_v60, 5  ;;  %v462_v12 = vadd.f32 %v456_v4, %v421_v61  ;;  %v2130_v15 = vperm.slane %v314_v8, 0  ;;  %v3426_v44 = vmov 683565275  }
  0x27   : > { %v497_v9 = vsel %vm3455_vm4, %v495_v63, %v496_v1  ;;  %v499_v10 = vsel %vm3455_vm4, %v496_v1, %v498_v5  ;;  %v3433_v46 = vmov 2475754826   ;;  %v3429_v48 = vmov 2131351028  }
  0x28   : > { %v2125_v11 = vadd.f32 %v497_v9, %v460_v59  ;;  %v2127_v13 = vadd.f32 %v499_v10, %v461_v62  ;;  %v501_v14 = vsel %vm3455_vm4, %v498_v5, %v500_v6  ;;  %v3431_v50 = vmov 2102212464  }
  0x29   : > { %v2136_v17 = vadd.f32 %v501_v14, %v462_v12  ;;  %v3435_v52 = vmov 920167782   ;;  %v3438_v61 = vmov 1326507024  }
  0x2a   : > { %3457 = vst [vmem:[#allocation2_spill] sm:$0xff] %v2125_v11  ;;  %v2134_v16 = vmul.f32 %v2130_v15, %v2125_v11  ;;  %v2140_v18 = vmul.f32 %v2130_v15, %v2127_v13 }
  0x2b   : > { %3458 = vst [vmem:[#allocation3_spill] sm:$0xff] %v2127_v13  ;;  %v2150_v25 = vmul.f32 %v2130_v15, %v2136_v17 }
  0x2c   : > { %3459 = vst [vmem:[#allocation4_spill] sm:$0xff] %v2134_v16  ;;  %v3423_v19 = vand.u32 2147483647, %v2134_v16  ;;  %v537_v20 = vand.u32 2139095040, %v2134_v16  ;;  %v3422_v21 = vand.u32 2147483647, %v2140_v18 }
  0x2d   : > { %3460 = vst [vmem:[#allocation5_spill] sm:$0xff] %v2136_v17  ;;  %v692_v22 = vand.u32 2139095040, %v2140_v18  ;;  %v847_v33 = vand.u32 2139095040, %v2150_v25 }
  0x2e   : > { %v538_v23 = vshrl.u32 %v537_v20, 23  ;;  %v541_v24 = vand.u32 8388607, %v3423_v19  ;;  %v696_v30 = vand.u32 8388607, %v3422_v21 }
  0x2f   : > { %v693_v26 = vshrl.u32 %v692_v22, 23  ;;  %v2161_v42 = vshrl.u32 %v847_v33, 23 }
  0x30   : > { %v1888_v27 = vadd.s32 4294967169, %v538_v23  ;;  %v542_v28 = vor.u32 8388608, %v541_v24  ;;  %v697_v36 = vor.u32 8388608, %v696_v30 }
  0x31   : > { %v1891_v29 = vadd.s32 4294967169, %v693_v26 }
  0x32   : > { %v544_v31 = vadd.s32 1, %v1888_v27  ;;  %v2155_v35 = vshll.u32 %v542_v28, 8  ;;  %v2169_v55 = vshll.u32 %v697_v36, 8 }
  0x33   : > { %v699_v32 = vadd.s32 1, %v1891_v29 }
  0x34   : > { %vm545_vm5 = vcmp.gt.s32.totalorder %v544_v31, 0  ;;  %v583_v54 = vand.u32 65535, %v2155_v35  ;;  %v584_v59 = vshrl.u32 %v2155_v35, 16 }
  0x35   : > { %v546_v34 = vsel %vm545_vm5, %v544_v31, 0  ;;  %vm700_vm6 = vcmp.gt.s32.totalorder %v699_v32, 0 }
  0x36   : > { %v548_v37 = vand.u32 31, %v546_v34  ;;  %v701_v38 = vsel %vm700_vm6, %v699_v32, 0  ;;  %v2157_v39 = vshrl.u32 %v546_v34, 5 }
  0x37   : > { %v2159_v41 = vand.u32 31, %v701_v38  ;;  %v2189_v14 = vshrl.u32 %v701_v38, 5 }
  0x38   : > { %v549_v43 = vsub.s32 32, %v548_v37  ;;  %v551_v45 = vshll.u32 %v3426_v44, %v548_v37  ;;  %v554_v47 = vshll.u32 %v3433_v46, %v548_v37  ;;  %v557_v49 = vshll.u32 %v3429_v48, %v548_v37 }
  0x39   : > { %v560_v51 = vshll.u32 %v3431_v50, %v548_v37  ;;  %v563_v53 = vshll.u32 %v3435_v52, %v548_v37  ;;  %vm566_vm7 = vcmp.lt.s32.totalorder %v2157_v39, 1  ;;  %vm569_vm8 = vcmp.lt.s32.totalorder %v2157_v39, 4 }
  0x3a   : > { %v552_v56 = vshrl.u32 %v3433_v46, %v549_v43  ;;  %v555_v57 = vshrl.u32 %v3429_v48, %v549_v43  ;;  %v558_v58 = vshrl.u32 %v3431_v50, %v549_v43  ;;  %v561_v60 = vshrl.u32 %v3435_v52, %v549_v43 }
  0x3b   : > { %v564_v62 = vshrl.u32 %v3438_v61, %v549_v43  ;;  %v2180_v5 = vsub.s32 32, %v2159_v41  ;;  %v550_v6 = vshrl.u32 %v3426_v44, %v549_v43  ;;  %vm568_vm9 = vcmp.lt.s32.totalorder %v2157_v39, 3 }
  0x3c   : > { %v553_v63 = vor.u32 %v552_v56, %v551_v45  ;;  %v556_v1 = vor.u32 %v555_v57, %v554_v47  ;;  %v559_v4 = vor.u32 %v558_v58, %v557_v49  ;;  %v562_v8 = vor.u32 %v561_v60, %v560_v51 }
  0x3d   : > { %v565_v9 = vor.u32 %v564_v62, %v563_v53  ;;  %vm567_vm10 = vcmp.lt.s32.totalorder %v2157_v39, 2  ;;  %v706_v23 = vshll.u32 %v3426_v44, %v2159_v41  ;;  %v709_v24 = vshll.u32 %v3433_v46, %v2159_v41 }
  0x3e   : > { %v574_v10 = vsel %vm566_vm7, %v553_v63, %v556_v1  ;;  %v578_v12 = vsel %vm566_vm7, %v556_v1, %v559_v4  ;;  %v575_v20 = vsel %vm569_vm8, %v562_v8, 920167782  ;;  %v571_v26 = vsel %vm569_vm8, %v559_v4, 2102212464 }
  0x3f   : > { %v579_v22 = vsel %vm569_vm8, %v565_v9, 1326507024  ;;  %v576_v27 = vsel %vm568_vm9, %v559_v4, %v575_v20  ;;  %v707_v29 = vshrl.u32 %v3433_v46, %v2180_v5  ;;  %v570_v30 = vsel %vm566_vm7, %v550_v6, %v553_v63 }
  0x40   : > { %v580_v28 = vsel %vm568_vm9, %v562_v8, %v579_v22  ;;  %v577_v31 = vsel %vm567_vm10, %v574_v10, %v576_v27  ;;  %v710_v33 = vshrl.u32 %v3429_v48, %v2180_v5  ;;  %v572_v43 = vsel %vm568_vm9, %v556_v1, %v571_v26 }
  0x41   : > { %v581_v32 = vsel %vm567_vm10, %v578_v12, %v580_v28  ;;  %v607_v37 = vand.u32 65535, %v577_v31  ;;  %v608_v38 = vshrl.u32 %v577_v31, 16  ;;  %v2217_v45 = vor.u32 %v707_v29, %v706_v23 }
  0x42   : > { %v585_v34 = vand.u32 65535, %v581_v32  ;;  %v586_v36 = vshrl.u32 %v581_v32, 16  ;;  %v2219_v47 = vor.u32 %v710_v33, %v709_v24  ;;  %v712_v49 = vshll.u32 %v3429_v48, %v2159_v41 }
  0x43   : > { %v713_v57 = vshrl.u32 %v3431_v50, %v2180_v5  ;;  %v609_v60 = vmul.u32 %v607_v37, %v583_v54  ;;  %v610_v62 = vmul.u32 %v608_v38, %v583_v54  ;;  %v611_v63 = vmul.u32 %v607_v37, %v584_v59 }
  0x44   : > { %v587_v51 = vmul.u32 %v585_v34, %v583_v54  ;;  %v588_v53 = vmul.u32 %v586_v36, %v583_v54  ;;  %v589_v56 = vmul.u32 %v585_v34, %v584_v59  ;;  %v590_v58 = vmul.u32 %v586_v36, %v584_v59 }
  0x45   : > { %v612_v8 = vmul.u32 %v608_v38, %v584_v59  ;;  %v613_v10 = vshll.u32 %v610_v62, 16  ;;  %v614_v12 = vshrl.u32 %v610_v62, 16  ;;  %v615_v20 = vshll.u32 %v611_v63, 16 }
  0x46   : > { %v591_v4 = vshll.u32 %v588_v53, 16  ;;  %v592_v6 = vshrl.u32 %v588_v53, 16  ;;  %v593_v1 = vshll.u32 %v589_v56, 16  ;;  %v594_v9 = vshrl.u32 %v589_v56, 16 }
  0x47   : > { %v616_v23 = vshrl.u32 %v611_v63, 16  ;;  %v715_v24 = vshll.u32 %v3431_v50, %v2159_v41  ;;  %v3440_v26 = vmov 0   ;;  %vm617_vm12 = vc.u32 %v609_v60, %v613_v10 }
  0x48   : > { %vm595_vm11 = vc.u32 %v587_v51, %v591_v4  ;;  %v597_v22 = vadd.s32 %v591_v4, %v587_v51  ;;  %v619_v54 = vadd.s32 %v613_v10, %v609_v60  ;;  %v716_v28 = vshrl.u32 %v3435_v52, %v2180_v5 }
  0x49   : > { %v596_v27 = vsel %vm595_vm11, 1, %v3440_v26  ;;  %v618_v59 = vsel %vm617_vm12, 1, %v3440_v26  ;;  %v718_v31 = vshll.u32 %v3435_v52, %v2159_v41  ;;  %v2234_v34 = vor.u32 %v713_v57, %v712_v49 }
  0x4a   : > { %v598_v29 = vadd.s32 %v596_v27, %v590_v58  ;;  %vm599_vm13 = vc.u32 %v597_v22, %v593_v1  ;;  %v620_v33 = vadd.s32 %v618_v59, %v612_v8  ;;  %vm621_vm14 = vc.u32 %v619_v54, %v615_v20 }
  0x4b   : > { %v600_v32 = vsel %vm599_vm13, 1, %v3440_v26  ;;  %v622_v37 = vsel %vm621_vm14, 1, %v3440_v26  ;;  %v717_v38 = vor.u32 %v716_v28, %v715_v24  ;;  %v719_v51 = vshrl.u32 %v3438_v61, %v2180_v5 }
  0x4c   : > { %v602_v36 = vadd.s32 %v600_v32, %v598_v29  ;;  %v2239_v53 = vadd.s32 %v619_v54, %v615_v20  ;;  %v624_v56 = vadd.s32 %v622_v37, %v620_v33  ;;  %vm721_vm15 = vcmp.lt.s32.totalorder %v2189_v14, 1 }
  0x4d   : > { %vm723_vm5 = vcmp.lt.s32.totalorder %v2189_v14, 3  ;;  %v720_v58 = vor.u32 %v719_v51, %v718_v31  ;;  %vm722_vm6 = vcmp.lt.s32.totalorder %v2189_v14, 2  ;;  %vm724_vm7 = vcmp.lt.s32.totalorder %v2189_v14, 4 }
  0x4e   : > { %v603_v41 = vadd.s32 %v602_v36, %v592_v6  ;;  %v573_v49 = vsel %vm567_vm10, %v570_v30, %v572_v43  ;;  %v625_v57 = vadd.s32 %v624_v56, %v614_v12  ;;  %v729_v60 = vsel %vm721_vm15, %v2217_v45, %v2219_v47  ;;  %v312_v12 = vld [vmem:[%s3420_s2 + $0x8] sm:$0xff] }
  0x4f   : > { %v730_v62 = vsel %vm724_vm7, %v717_v38, 920167782  ;;  %v733_v39 = vsel %vm721_vm15, %v2219_v47, %v2234_v34  ;;  %v734_v6 = vsel %vm724_vm7, %v720_v58, 1326507024  ;;  %v1894_v1 = vadd.s32 4294967169, %v2161_v42 }
  0x50   : > { %v2253_v63 = vadd.s32 %v603_v41, %v594_v9  ;;  %v731_v4 = vsel %vm723_vm5, %v2234_v34, %v730_v62  ;;  %v626_v30 = vadd.s32 %v625_v57, %v616_v23  ;;  %v2268_v8 = vperm.slane %v2063_v0, 7 }
  0x51   : > { %v732_v43 = vsel %vm722_vm6, %v729_v60, %v731_v4  ;;  %v627_v9 = vmul.u32 %v2155_v35, %v573_v49  ;;  %v735_v10 = vsel %vm723_vm5, %v717_v38, %v734_v6  ;;  %v738_v42 = vand.u32 65535, %v2169_v55 }
  0x52   : > { %vm629_vm8 = vc.u32 %v2253_v63, %v2239_v53  ;;  %v630_v20 = vadd.s32 1, %v626_v30  ;;  %v736_v22 = vsel %vm722_vm6, %v733_v39, %v735_v10  ;;  %v763_v23 = vshrl.u32 %v732_v43, 16 }
  0x53   : > { %v349_v35 = vmul.f32 %v2268_v8, %v2069_v2  ;;  %v2285_v24 = vmul.f32 %v2268_v8, %v2071_v3  ;;  %v741_v54 = vshrl.u32 %v736_v22, 16  ;;  %v854_v28 = vadd.s32 1, %v1894_v1 }
  0x54   : > { %v631_v27 = vsel %vm629_vm8, %v630_v20, %v626_v30  ;;  %v2287_v29 = vperm.slane %v312_v12, 0  ;;  %v739_v31 = vshrl.u32 %v2169_v55, 16  ;;  %v762_v32 = vand.u32 65535, %v732_v43 }
  0x55   : > { %v632_v59 = vadd.s32 %v631_v27, %v627_v9  ;;  %v2290_v33 = vmul.u32 %v763_v23, %v738_v42  ;;  %v355_v36 = vrot.slane %v349_v35, 1  ;;  %v3425_v37 = vrot.slane %v2285_v24, 1 }
  0x56   : > { %v386_v38 = vmul.f32 %v2287_v29, %v2069_v2  ;;  %v2297_v51 = vmul.f32 %v2287_v29, %v2071_v3  ;;  %v740_v56 = vand.u32 65535, %v736_v22  ;;  %v2299_v41 = vmul.u32 %v741_v54, %v738_v42 }
  0x57   : > { %vm855_vm9 = vcmp.gt.s32.totalorder %v854_v28, 0  ;;  %v2302_v58 = vperm.slane %v2063_v0, 6  ;;  %v633_v49 = vadd.s32 536870912, %v632_v59  ;;  %v764_v57 = vmul.u32 %v762_v32, %v738_v42 }
  0x58   : > { %v2304_v60 = vmul.u32 %v762_v32, %v739_v31  ;;  %v768_v62 = vshll.u32 %v2290_v33, 16  ;;  %v357_v39 = vsel %vm336_vm0, %v355_v36, %v3425_v37  ;;  %v392_v30 = vrot.slane %v386_v38, 2 }
  0x59   : > { %v323_v4 = vmul.f32 %v2302_v58, %v2069_v2  ;;  %v856_v43 = vsel %vm855_vm9, %v854_v28, 0  ;;  %v3424_v6 = vrot.slane %v2297_v51, 2  ;;  %v742_v1 = vmul.u32 %v740_v56, %v738_v42 }
  0x5a   : > { %v2313_v0 = vmul.u32 %v740_v56, %v739_v31  ;;  %v746_v9 = vshll.u32 %v2299_v41, 16  ;;  %v2316_v10 = vperm.slane %v312_v12, 1  ;;  %v2318_v20 = vshrl.u32 %v633_v49, 30 }
  0x5b   : > { %v3428_v22 = vshll.u32 %v2304_v60, 16  ;;  %vm772_vm10 = vc.u32 %v764_v57, %v768_v62  ;;  %v2321_v35 = vadd.s32 %v768_v62, %v764_v57  ;;  %v858_v27 = vand.u32 31, %v856_v43 }
  0x5c   : > { %v363_v32 = vadd.f32 %v357_v39, %v323_v4  ;;  %v423_v28 = vmul.f32 %v2316_v10, %v2069_v2  ;;  %v2327_v42 = vmul.f32 %v2316_v10, %v2071_v3  ;;  %v394_v36 = vsel %vm373_vm1, %v392_v30, %v3424_v6 }
  0x5d   : > { %v748_v38 = vshll.u32 %v2313_v0, 16  ;;  %v752_v56 = vadd.s32 %v746_v9, %v742_v1  ;;  %v767_v49 = vmul.u32 %v763_v23, %v739_v31  ;;  %v635_v57 = vshll.u32 %v2318_v20, 30 }
  0x5e   : > { %vm750_vm11 = vc.u32 %v742_v1, %v746_v9  ;;  %v773_v62 = vsel %vm772_vm10, 1, %v3440_v26  ;;  %v2335_v4 = vperm.slane %v312_v12, 2  ;;  %v2337_v39 = vperm.slane %v312_v12, 3 }
  0x5f   : > { %vm776_vm12 = vc.u32 %v2321_v35, %v3428_v22  ;;  %v2342_v21 = vsub.s32 32, %v858_v27  ;;  %v2344_v30 = vadd.f32 %v394_v36, %v363_v32  ;;  %v429_v19 = vrot.slane %v423_v28, 3 }
  0x60   : > { %v745_v6 = vmul.u32 %v741_v54, %v739_v31  ;;  %v751_v1 = vsel %vm750_vm11, 1, %v3440_v26  ;;  %vm2348_vm13 = vc.u32 %v752_v56, %v748_v38  ;;  %v775_v12 = vadd.s32 %v773_v62, %v767_v49 }
  0x61   : > { %v3442_v37 = vand.u32 2147483647, %v2150_v25  ;;  %v2353_v44 = vsub.s32 %v632_v59, %v635_v57  ;;  %v777_v22 = vsel %vm776_vm12, 1, %v3440_v26  ;;  %v864_v32 = vshll.u32 %v3433_v46, %v858_v27 }
  0x62   : > { %v867_v28 = vshll.u32 %v3429_v48, %v858_v27  ;;  %v865_v54 = vshrl.u32 %v3429_v48, %v2342_v21  ;;  %v868_v31 = vshrl.u32 %v3431_v50, %v2342_v21  ;;  %v870_v36 = vshll.u32 %v3431_v50, %v858_v27 }
  0x63   : > { %v871_v38 = vshrl.u32 %v3435_v52, %v2342_v21  ;;  %v753_v56 = vadd.s32 %v751_v1, %v745_v6  ;;  %v2365_v59 = vshrl.u32 %v856_v43, 5  ;;  %v873_v49 = vshll.u32 %v3435_v52, %v858_v27 }
  0x64   : > { %v874_v57 = vshrl.u32 %v3438_v61, %v2342_v21  ;;  %v747_v62 = vshrl.u32 %v2299_v41, 16  ;;  %v755_v48 = vsel %vm2348_vm13, 1, %v3440_v26  ;;  %v769_v23 = vshrl.u32 %v2290_v33, 16 }
  0x65   : > { %v851_v50 = vand.u32 8388607, %v3442_v37  ;;  %v638_v6 = vsub.s32 0, %v2353_v44  ;;  %v779_v43 = vadd.s32 %v777_v22, %v775_v12  ;;  %v3463_v1 = vmov 683565275  }
  0x66   : > { %v861_v46 = vshll.u32 %v3463_v1, %v858_v27  ;;  %v3464_v52 = vmov 2475754826   ;;  %vm637_vm14 = vcmp.lt.s32.totalorder %v2353_v44, 0  ;;  %v2382_v41 = vor.u32 %v865_v54, %v864_v32 }
  0x67   : > { %v862_v17 = vshrl.u32 %v3464_v52, %v2342_v21  ;;  %v2384_v61 = vor.u32 %v868_v31, %v867_v28  ;;  %v872_v9 = vor.u32 %v871_v38, %v870_v36  ;;  %v757_v26 = vadd.s32 %v755_v48, %v753_v56 }
  0x68   : > { %v875_v33 = vor.u32 %v874_v57, %v873_v49  ;;  %vm876_vm8 = vcmp.lt.s32.totalorder %v2365_v59, 1  ;;  %vm879_vm9 = vcmp.lt.s32.totalorder %v2365_v59, 4  ;;  %v3465_v22 = vrot.slane %v2327_v42, 3 }
  0x69   : > { %v464_v12 = vmul.f32 %v2335_v4, %v2069_v2  ;;  %v2395_v32 = vmul.f32 %v2335_v4, %v2071_v3  ;;  %v852_v28 = vor.u32 8388608, %v851_v50  ;;  %v639_v54 = vsel %vm637_vm14, %v638_v6, %v2353_v44 }
  0x6a   : > { %v431_v27 = vsel %vm410_vm2, %v429_v19, %v3465_v22  ;;  %v771_v48 = vshrl.u32 %v2304_v60, 16  ;;  %v2399_v31 = vor.u32 %v862_v17, %v861_v46  ;;  %vm878_vm10 = vcmp.lt.s32.totalorder %v2365_v59, 3 }
  0x6b   : > { %v780_v36 = vadd.s32 %v779_v43, %v769_v23  ;;  %vm877_vm11 = vcmp.lt.s32.totalorder %v2365_v59, 2  ;;  %v885_v19 = vsel %vm879_vm9, %v872_v9, 920167782  ;;  %v888_v38 = vsel %vm876_vm8, %v2382_v41, %v2384_v61 }
  0x6c   : > { %v705_v50 = vshrl.u32 %v3463_v1, %v2180_v5  ;;  %v749_v56 = vshrl.u32 %v2313_v0, 16  ;;  %v758_v17 = vadd.s32 %v757_v26, %v747_v62  ;;  %v889_v46 = vsel %vm879_vm9, %v875_v33, 1326507024 }
  0x6d   : > { %v640_v23 = vclz %v639_v54  ;;  %v726_v49 = vsel %vm724_vm7, %v2234_v34, 2102212464  ;;  %v890_v57 = vsel %vm878_vm10, %v872_v9, %v889_v46  ;;  %v2419_v6 = vshll.u32 %v852_v28, 8 }
  0x6e   : > { %v472_v43 = vrot.slane %v464_v12, 4  ;;  %v884_v5 = vsel %vm876_vm8, %v2399_v31, %v2382_v41  ;;  %v886_v26 = vsel %vm878_vm10, %v2384_v61, %v885_v19  ;;  %v891_v0 = vsel %vm877_vm11, %v888_v38, %v890_v57 }
  0x6f   : > { %v473_v34 = vrot.slane %v2395_v32, 4  ;;  %v509_v62 = vmul.f32 %v2337_v39, %v2069_v2  ;;  %v2435_v9 = vmul.f32 %v2337_v39, %v2071_v3  ;;  %v781_v33 = vadd.s32 %v780_v36, %v771_v48 }
  0x70   : > { %v725_v22 = vsel %vm721_vm15, %v705_v50, %v2217_v45  ;;  %v727_v12 = vsel %vm723_vm5, %v2219_v47, %v726_v49  ;;  %v2443_v28 = vadd.s32 %v758_v17, %v749_v56  ;;  %v3466_v54 = vshll.u32 %v2304_v60, 16 }
  0x71   : > { %v1889_v2 = vadd.s32 4294967294, %v640_v23  ;;  %v887_v38 = vsel %vm877_vm11, %v884_v5, %v886_v26  ;;  %v893_v48 = vand.u32 65535, %v2419_v6  ;;  %v896_v36 = vshrl.u32 %v891_v0, 16 }
  0x72   : > { %v2448_v19 = vadd.s32 %v2321_v35, %v3466_v54  ;;  %v2455_v45 = vmul.f32 %v2268_v8, %v2084_v7  ;;  %v437_v47 = vadd.f32 %v431_v27, %v2344_v30  ;;  %v474_v60 = vsel %vm3456_vm3, %v472_v43, %v473_v34 }
  0x73   : > { %v728_v35 = vsel %vm722_vm6, %v725_v22, %v727_v12  ;;  %v785_v50 = vadd.s32 1, %v781_v33  ;;  %v517_v56 = vrot.slane %v509_v62, 5  ;;  %v3445_v17 = vrot.slane %v2435_v9, 5 }
  0x74   : > { %vm784_vm15 = vc.u32 %v2443_v28, %v2448_v19  ;;  %v918_v46 = vshrl.u32 %v887_v38, 16  ;;  %vm1890_vm5 = vcmp.lt.s32.totalorder %v1889_v2, 0  ;;  %v894_v8 = vshrl.u32 %v2419_v6, 16 }
  0x75   : > { %v895_v23 = vand.u32 65535, %v891_v0  ;;  %v2467_v30 = vmul.u32 %v896_v36, %v893_v48  ;;  %v3444_v27 = vrot.slane %v2455_v45, 1  ;;  %v2472_v14 = vmul.f32 %v2287_v29, %v2084_v7 }
  0x76   : > { %v782_v49 = vmul.u32 %v2169_v55, %v728_v35  ;;  %v917_v57 = vand.u32 65535, %v887_v38  ;;  %v324_v43 = vmul.f32 %v2302_v58, %v2071_v3  ;;  %v786_v5 = vsel %vm784_vm15, %v785_v50, %v781_v33 }
  0x77   : > { %v3467_v26 = vrot.slane %v2285_v24, 1  ;;  %v482_v62 = vadd.f32 %v474_v60, %v437_v47  ;;  %v643_v22 = vsel %vm1890_vm5, 0, %v1889_v2  ;;  %v2482_v12 = vmul.u32 %v918_v46, %v893_v48 }
  0x78   : > { %v519_v29 = vsel %vm3455_vm4, %v517_v56, %v3445_v17  ;;  %v897_v55 = vmul.u32 %v895_v23, %v893_v48  ;;  %v2487_v54 = vmul.u32 %v895_v23, %v894_v8  ;;  %v901_v3 = vshll.u32 %v2467_v30, 16 }
  0x79   : > { %v359_v0 = vsel %vm336_vm0, %v3467_v26, %v3444_v27  ;;  %v3443_v33 = vrot.slane %v2472_v14, 2  ;;  %v787_v38 = vadd.s32 %v786_v5, %v782_v49  ;;  %v919_v35 = vmul.u32 %v917_v57, %v893_v48 }
  0x7a   : > { %v2491_v24 = vmul.u32 %v917_v57, %v894_v8  ;;  %v364_v50 = vadd.f32 %v359_v0, %v324_v43  ;;  %v648_v47 = vsub.s32 4294967266, %v643_v22  ;;  %v3468_v2 = vrot.slane %v2297_v51, 2 }
  0x7b   : > { %v2500_v56 = vmul.f32 %v2316_v10, %v2084_v7  ;;  %v2502_v23 = vadd.f32 %v519_v29, %v482_v62  ;;  %v923_v26 = vshll.u32 %v2482_v12, 16  ;;  %v2507_v48 = vmul.f32 %v2335_v4, %v2084_v7 }
  0x7c   : > { %v396_v60 = vsel %vm373_vm1, %v3468_v2, %v3443_v33  ;;  %v903_v49 = vshll.u32 %v2487_v54, 16  ;;  %vm905_vm6 = vc.u32 %v897_v55, %v901_v3  ;;  %v907_v57 = vadd.s32 %v901_v3, %v897_v55 }
  0x7d   : > { %3469 = vst [vmem:[#allocation6_spill] sm:$0xff] %v2502_v23  ;;  %v628_v51 = vadd.s32 %v2239_v53, %v2253_v63  ;;  %v788_v43 = vadd.s32 536870912, %v787_v38  ;;  %v925_v5 = vshll.u32 %v2491_v24, 16  ;;  %vm927_vm7 = vc.u32 %v919_v35, %v923_v26 }
  0x7e   : > { %v644_v10 = vsub.s32 32, %v643_v22  ;;  %v649_v0 = vadd.s32 127, %v648_v47  ;;  %v900_v62 = vmul.u32 %v896_v36, %v894_v8  ;;  %v929_v29 = vadd.s32 %v923_v26, %v919_v35 }
  0x7f   : > { %v432_v2 = vrot.slane %v2500_v56, 3  ;;  %v3470_v37 = vmov 0   ;;  %v922_v27 = vmul.u32 %v918_v46, %v894_v8  ;;  %v2517_v17 = vmul.f32 %v2130_v15, %v2502_v23 }
  0x80   : > { %v906_v33 = vsel %vm905_vm6, 1, %v3470_v37  ;;  %v401_v55 = vadd.f32 %v396_v60, %v364_v50  ;;  %vm909_vm12 = vc.u32 %v907_v57, %v903_v49  ;;  %v928_v53 = vsel %vm927_vm7, 1, %v3470_v37 }
  0x81   : > { %v3471_v63 = vrot.slane %v2327_v42, 3  ;;  %v475_v3 = vrot.slane %v2507_v48, 4  ;;  %v2526_v35 = vshrl.u32 %v788_v43, 30  ;;  %vm931_vm13 = vc.u32 %v929_v29, %v925_v5 }
  0x82   : > { %v645_v46 = vshll.u32 %v2353_v44, %v643_v22  ;;  %v646_v8 = vshrl.u32 %v628_v51, %v644_v10  ;;  %v650_v47 = vshll.u32 %v649_v0, 23  ;;  %v908_v26 = vadd.s32 %v906_v33, %v900_v62 }
  0x83   : > { %v433_v36 = vsel %vm410_vm2, %v3471_v63, %v432_v2  ;;  %v2531_v50 = vmul.f32 %v2337_v39, %v2084_v7  ;;  %v910_v60 = vsel %vm909_vm12, 1, %v3470_v37  ;;  %v930_v49 = vadd.s32 %v928_v53, %v922_v27 }
  0x84   : > { %v1015_v42 = vand.u32 2139095040, %v2517_v17  ;;  %v438_v57 = vadd.f32 %v433_v36, %v401_v55  ;;  %v932_v63 = vsel %vm931_vm13, 1, %v3470_v37  ;;  %v476_v44 = vsel %vm3456_vm3, %v473_v34, %v475_v3 }
  0x85   : > { %v790_v22 = vshll.u32 %v2526_v35, 30  ;;  %v647_v51 = vor.u32 %v646_v8, %v645_v46  ;;  %v651_v43 = vor.u32 4788187, %v650_v47  ;;  %v902_v10 = vshrl.u32 %v2467_v30, 16 }
  0x86   : > { %v1016_v33 = vshrl.u32 %v1015_v42, 23  ;;  %v912_v0 = vadd.s32 %v910_v60, %v908_v26  ;;  %v520_v27 = vrot.slane %v2531_v50, 5  ;;  %v924_v62 = vshrl.u32 %v2482_v12, 16 }
  0x87   : > { %v934_v55 = vadd.s32 %v932_v63, %v930_v49  ;;  %v325_v36 = vmul.f32 %v2302_v58, %v2084_v7  ;;  %v483_v32 = vadd.f32 %v476_v44, %v438_v57  ;;  %v3472_v34 = vrot.slane %v2435_v9, 5 }
  0x88   : > { %v1897_v53 = vadd.s32 4294967169, %v1016_v33  ;;  %v2552_v8 = vsub.s32 %v787_v38, %v790_v22  ;;  %v860_v30 = vshrl.u32 %v3463_v1, %v2342_v21  ;;  %v652_v26 = vand.u32 2147483647, %v651_v43 }
  0x89   : > { %v521_v46 = vsel %vm3455_vm4, %v3472_v34, %v520_v27  ;;  %v654_v12 = vcvt.s32.f32 %v647_v51  ;;  %v904_v60 = vshrl.u32 %v2487_v54, 16  ;;  %v913_v49 = vadd.s32 %v912_v0, %v902_v10 }
  0x8a   : > { %v1022_v47 = vadd.s32 1, %v1897_v53  ;;  %v926_v7 = vshrl.u32 %v2491_v24, 16  ;;  %v935_v58 = vadd.s32 %v934_v55, %v924_v62  ;;  %v3473_v42 = vrot.slane %v2455_v45, 1 }
  0x8b   : > { %v881_v38 = vsel %vm879_vm9, %v2384_v61, 2102212464  ;;  %v467_v21 = vmul.f32 %v2335_v4, %v2107_v40  ;;  %v2565_v63 = vadd.f32 %v521_v46, %v483_v32  ;;  %v793_v54 = vsub.s32 0, %v2552_v8 }
  0x8c   : > { %vm1023_vm14 = vcmp.gt.s32.totalorder %v1022_v47, 0  ;;  %v365_v9 = vadd.f32 %v3473_v42, %v325_v36  ;;  %v880_v24 = vsel %vm876_vm8, %v860_v30, %v2399_v31  ;;  %v655_v44 = vmul.f32 %v654_v12, %v652_v26 }
  0x8d   : > { %v1024_v57 = vsel %vm1023_vm14, %v1022_v47, 0  ;;  %3474 = vst [vmem:[#allocation7_spill] sm:$0xff] %v2565_v63  ;;  %v2571_v22 = vadd.s32 %v913_v49, %v904_v60  ;;  %v2573_v45 = vadd.s32 %v929_v29, %v925_v5  ;;  %vm792_vm9 = vcmp.lt.s32.totalorder %v2552_v8, 0 }
  0x8e   : > { %v1026_v33 = vand.u32 31, %v1024_v57  ;;  %v882_v61 = vsel %vm878_vm10, %v2382_v41, %v881_v38  ;;  %v936_v4 = vadd.s32 %v935_v58, %v926_v7  ;;  %v3446_v51 = vand.u32 2147483647, %v2517_v17 }
  0x8f   : > { %v3475_v43 = vrot.slane %v2472_v14, 2  ;;  %v477_v31 = vrot.slane %v467_v21, 4  ;;  %v2586_v5 = vmul.f32 %v2337_v39, %v2107_v40  ;;  %vm536_vm8 = vcmp.lt.s32.totalorder %v2134_v16, 0 }
  0x90   : > { %v2582_v0 = vsub.s32 32, %v1026_v33  ;;  %v2591_v29 = vmul.f32 %v2130_v15, %v2565_v63  ;;  %v656_v41 = vxor.u32 2147483648, %v655_v44  ;;  %v794_v62 = vsel %vm792_vm9, %v793_v54, %v2552_v8 }
  0x91   : > { %v402_v10 = vadd.f32 %v3475_v43, %v365_v9  ;;  %v883_v14 = vsel %vm877_vm11, %v880_v24, %v882_v61  ;;  %vm939_vm10 = vc.u32 %v2571_v22, %v2573_v45  ;;  %v940_v55 = vadd.s32 1, %v936_v4 }
  0x92   : > { %v1019_v40 = vand.u32 8388607, %v3446_v51  ;;  %v1029_v39 = vshll.u32 %v3463_v1, %v1026_v33  ;;  %v1032_v53 = vshll.u32 %v3464_v52, %v1026_v33  ;;  %v1030_v36 = vshrl.u32 %v3464_v52, %v2582_v0 }
  0x93   : > { %v3476_v32 = vmov 2131351028   ;;  %v3477_v46 = vmov 2102212464   ;;  %v795_v47 = vclz %v794_v62  ;;  %v937_v26 = vmul.u32 %v2419_v6, %v883_v14 }
  0x94   : > { %v1033_v34 = vshrl.u32 %v3476_v32, %v2582_v0  ;;  %v1035_v59 = vshll.u32 %v3476_v32, %v1026_v33  ;;  %v1036_v30 = vshrl.u32 %v3477_v46, %v2582_v0  ;;  %v2610_v12 = vshrl.u32 %v1024_v57, 5 }
  0x95   : > { %v1170_v60 = vand.u32 2139095040, %v2591_v29  ;;  %v1038_v49 = vshll.u32 %v3477_v46, %v1026_v33  ;;  %v3478_v7 = vmov 920167782   ;;  %v3479_v9 = vmov 1326507024  }
  0x96   : > { %v1039_v58 = vshrl.u32 %v3478_v7, %v2582_v0  ;;  %v1041_v42 = vshll.u32 %v3478_v7, %v1026_v33  ;;  %v1042_v38 = vshrl.u32 %v3479_v9, %v2582_v0  ;;  %v3480_v21 = vand.u32 2147483647, %v2134_v16 }
  0x97   : > { %v657_v6 = vsel %vm536_vm8, %v656_v41, %v655_v44  ;;  %v941_v57 = vsel %vm939_vm10, %v940_v55, %v936_v4  ;;  %v1020_v24 = vor.u32 8388608, %v1019_v40  ;;  %v2630_v61 = vor.u32 %v1030_v36, %v1029_v39 }
  0x98   : > { %vm2621_vm11 = vcmp.le.f32.partialorder %v3480_v21, 0.7853982  ;;  %v2632_v33 = vor.u32 %v1033_v34, %v1032_v53  ;;  %v1037_v43 = vor.u32 %v1036_v30, %v1035_v59  ;;  %v1040_v62 = vor.u32 %v1039_v58, %v1038_v49 }
  0x99   : > { %v1043_v14 = vor.u32 %v1042_v38, %v1041_v42  ;;  %vm1044_vm15 = vcmp.lt.s32.totalorder %v2610_v12, 1  ;;  %vm1046_vm5 = vcmp.lt.s32.totalorder %v2610_v12, 3  ;;  %vm1047_vm6 = vcmp.lt.s32.totalorder %v2610_v12, 4 }
  0x9a   : > { %v1892_v21 = vadd.s32 4294967294, %v795_v47  ;;  %v942_v44 = vadd.s32 %v941_v57, %v937_v26  ;;  %v1053_v41 = vsel %vm1047_vm6, %v1040_v62, 920167782  ;;  %v1171_v4 = vshrl.u32 %v1170_v60, 23 }
  0x9b   : > { %v439_v55 = vadd.f32 %v432_v2, %v402_v10  ;;  %v2641_v40 = vshll.u32 %v1020_v24, 8  ;;  %v478_v39 = vsel %vm3456_vm3, %v475_v3, %v477_v31  ;;  %vm1045_vm7 = vcmp.lt.s32.totalorder %v2610_v12, 2 }
  0x9c   : > { %v1052_v53 = vsel %vm1044_vm15, %v2630_v61, %v2632_v33  ;;  %v1054_v36 = vsel %vm1046_vm5, %v1037_v43, %v1053_v41  ;;  %v522_v34 = vrot.slane %v2586_v5, 5  ;;  %v2657_v56 = vsel %vm2621_vm11, %v2134_v16, %v657_v6 }
  0x9d   : > { %v1056_v48 = vsel %vm1044_vm15, %v2632_v33, %v1037_v43  ;;  %v1057_v2 = vsel %vm1047_vm6, %v1043_v14, 1326507024  ;;  %vm1893_vm12 = vcmp.lt.s32.totalorder %v1892_v21, 0  ;;  %v943_v3 = vadd.s32 536870912, %v942_v44 }
  0x9e   : > { %v1058_v10 = vsel %vm1046_vm5, %v1040_v62, %v1057_v2  ;;  %v1900_v31 = vadd.s32 4294967169, %v1171_v4  ;;  %v1055_v5 = vsel %vm1045_vm7, %v1052_v53, %v1054_v36  ;;  %v1061_v30 = vand.u32 65535, %v2641_v40 }
  0x9f   : > { %v1059_v59 = vsel %vm1045_vm7, %v1056_v48, %v1058_v10  ;;  %v1062_v47 = vshrl.u32 %v2641_v40, 16  ;;  %v2674_v26 = vmul.f32 %v2657_v56, %v2657_v56  ;;  %v2676_v58 = vadd.f32 %v478_v39, %v439_v55 }
  0xa0   : > { %v1063_v60 = vand.u32 65535, %v1059_v59  ;;  %v1064_v49 = vshrl.u32 %v1059_v59, 16  ;;  %v523_v42 = vsel %vm3455_vm4, %v520_v27, %v522_v34  ;;  %v2682_v6 = vsel %vm1893_vm12, 0, %v1892_v21 }
  0xa1   : > { %v2684_v57 = vshrl.u32 %v943_v3, 30  ;;  %v1086_v24 = vshrl.u32 %v1055_v5, 16  ;;  %v1177_v62 = vadd.s32 1, %v1900_v31  ;;  %v1085_v53 = vand.u32 65535, %v1055_v5 }
  0xa2   : > { %v1065_v14 = vmul.u32 %v1063_v60, %v1061_v30  ;;  %v1066_v41 = vmul.u32 %v1064_v49, %v1061_v30  ;;  %v1067_v4 = vmul.u32 %v1063_v60, %v1062_v47  ;;  %v663_v36 = vmul.f32 -0.001358992, %v2674_v26 }
  0xa3   : > { %v670_v55 = vmul.f32 -0.00019511016, %v2674_v26  ;;  %v783_v50 = vadd.s32 %v2448_v19, %v2443_v28  ;;  %v799_v27 = vsub.s32 32, %v2682_v6  ;;  %v800_v21 = vshll.u32 %v2552_v8, %v2682_v6 }
  0xa4   : > { %v1068_v39 = vmul.u32 %v1064_v49, %v1062_v47  ;;  %v1069_v34 = vshll.u32 %v1066_v41, 16  ;;  %v1071_v48 = vshll.u32 %v1067_v4, 16  ;;  %v803_v2 = vsub.s32 4294967266, %v2682_v6 }
  0xa5   : > { %v945_v3 = vshll.u32 %v2684_v57, 30  ;;  %v1088_v10 = vmul.u32 %v1086_v24, %v1061_v30  ;;  %vm1178_vm13 = vcmp.gt.s32.totalorder %v1177_v62, 0  ;;  %v1028_v31 = vshrl.u32 %v3463_v1, %v2582_v0 }
  0xa6   : > { %vm1073_vm14 = vc.u32 %v1065_v14, %v1069_v34  ;;  %v1075_v5 = vadd.s32 %v1069_v34, %v1065_v14  ;;  %v1087_v28 = vmul.u32 %v1085_v53, %v1061_v30  ;;  %v1049_v19 = vsel %vm1047_vm6, %v1037_v43, 2102212464 }
  0xa7   : > { %v1070_v59 = vshrl.u32 %v1066_v41, 16  ;;  %v1074_v8 = vsel %vm1073_vm14, 1, %v3470_v37  ;;  %v1089_v60 = vmul.u32 %v1085_v53, %v1062_v47  ;;  %v1090_v6 = vmul.u32 %v1086_v24, %v1062_v47 }
  0xa8   : > { %v1076_v49 = vadd.s32 %v1074_v8, %v1068_v39  ;;  %vm1077_vm9 = vc.u32 %v1075_v5, %v1071_v48  ;;  %v1091_v51 = vshll.u32 %v1088_v10, 16  ;;  %v804_v38 = vadd.s32 127, %v803_v2 }
  0xa9   : > { %v2700_v63 = vsub.s32 %v942_v44, %v945_v3  ;;  %v1078_v13 = vsel %vm1077_vm9, 1, %v3470_v37  ;;  %v1093_v0 = vshll.u32 %v1089_v60, 16  ;;  %v1048_v30 = vsel %vm1044_vm15, %v1028_v31, %v2630_v61 }
  0xaa   : > { %v1080_v14 = vadd.s32 %v1078_v13, %v1076_v49  ;;  %vm1095_vm10 = vc.u32 %v1087_v28, %v1091_v51  ;;  %v1097_v43 = vadd.s32 %v1091_v51, %v1087_v28  ;;  %v1050_v41 = vsel %vm1046_vm5, %v2632_v33, %v1049_v19 }
  0xab   : > { %v1072_v53 = vshrl.u32 %v1067_v4, 16  ;;  %v1096_v47 = vsel %vm1095_vm10, 1, %v3470_v37  ;;  %v1179_v44 = vsel %vm1178_vm13, %v1177_v62, 0  ;;  %v1092_v39 = vshrl.u32 %v1088_v10, 16 }
  0xac   : > { %v1081_v24 = vadd.s32 %v1080_v14, %v1070_v59  ;;  %v1098_v34 = vadd.s32 %v1096_v47, %v1090_v6  ;;  %vm1099_vm6 = vc.u32 %v1097_v43, %v1093_v0  ;;  %v801_v48 = vshrl.u32 %v783_v50, %v799_v27 }
  0xad   : > { %v805_v2 = vshll.u32 %v804_v38, 23  ;;  %v1100_v61 = vsel %vm1099_vm6, 1, %v3470_v37  ;;  %v3449_v13 = vand.u32 2147483647, %v2591_v29  ;;  %v948_v51 = vsub.s32 0, %v2700_v63 }
  0xae   : > { %v1094_v3 = vshrl.u32 %v1089_v60, 16  ;;  %v1102_v31 = vadd.s32 %v1100_v61, %v1098_v34  ;;  %v1181_v33 = vand.u32 31, %v1179_v44  ;;  %vm947_vm15 = vcmp.lt.s32.totalorder %v2700_v63, 0 }
  0xaf   : > { %v1051_v62 = vsel %vm1045_vm7, %v1048_v30, %v1050_v41  ;;  %v2717_v4 = vadd.s32 %v1081_v24, %v1072_v53  ;;  %v2719_v10 = vadd.s32 %v1097_v43, %v1093_v0  ;;  %v2722_v38 = vadd.f32 %v523_v42, %v2676_v58 }
  0xb0   : > { %v3484_v50 = vsub.s32 4, %v2318_v20  ;;  %v1103_v5 = vadd.s32 %v1102_v31, %v1092_v39  ;;  %v2729_v28 = vsub.s32 32, %v1181_v33  ;;  %v664_v19 = vadd.f32 0.041655596, %v663_v36 }
  0xb1   : > { %3483 = vst [vmem:[#allocation8_spill] sm:$0xff] %v2722_v38  ;;  %v671_v59 = vadd.f32 0.008332121, %v670_v55  ;;  %v802_v12 = vor.u32 %v801_v48, %v800_v21  ;;  %v806_v8 = vor.u32 4788187, %v805_v2  ;;  %v949_v60 = vsel %vm947_vm15, %v948_v51, %v2700_v63 }
  0xb2   : > { %v659_v27 = vsel %vm536_vm8, %v3484_v50, %v2318_v20  ;;  %v1104_v49 = vadd.s32 %v1103_v5, %v1094_v3  ;;  %v1105_v6 = vmul.u32 %v2641_v40, %v1051_v62  ;;  %v1174_v58 = vand.u32 8388607, %v3449_v13 }
  0xb3   : > { %vm1107_vm5 = vc.u32 %v2717_v4, %v2719_v10  ;;  %v2737_v42 = vshrl.u32 %v1179_v44, 5  ;;  %v1187_v20 = vshll.u32 %v3464_v52, %v1181_v33  ;;  %v1188_v36 = vshrl.u32 %v3476_v32, %v2729_v28 }
  0xb4   : > { %v1108_v55 = vadd.s32 1, %v1104_v49  ;;  %v1190_v21 = vshll.u32 %v3476_v32, %v1181_v33  ;;  %v1191_v0 = vshrl.u32 %v3477_v46, %v2729_v28  ;;  %v1193_v40 = vshll.u32 %v3477_v46, %v1181_v33 }
  0xb5   : > { %v950_v30 = vclz %v949_v60  ;;  %v1184_v14 = vshll.u32 %v3463_v1, %v1181_v33  ;;  %v1185_v43 = vshrl.u32 %v3464_v52, %v2729_v28  ;;  %v1194_v41 = vshrl.u32 %v3478_v7, %v2729_v28 }
  0xb6   : > { %vm691_vm8 = vcmp.lt.s32.totalorder %v2140_v18, 0  ;;  %v1109_v53 = vsel %vm1107_vm5, %v1108_v55, %v1104_v49  ;;  %v1175_v47 = vor.u32 8388608, %v1174_v58  ;;  %v1196_v44 = vshll.u32 %v3478_v7, %v1181_v33 }
  0xb7   : > { %v1197_v24 = vshrl.u32 %v3479_v9, %v2729_v28  ;;  %v807_v39 = vand.u32 2147483647, %v806_v8  ;;  %v809_v34 = vcvt.s32.f32 %v802_v12  ;;  %v1110_v48 = vadd.s32 %v1109_v53, %v1105_v6 }
  0xb8   : > { %v1195_v2 = vor.u32 %v1194_v41, %v1193_v40  ;;  %v2755_v61 = vor.u32 %v1188_v36, %v1187_v20  ;;  %v2757_v51 = vor.u32 %v1191_v0, %v1190_v21  ;;  %vm1202_vm7 = vcmp.lt.s32.totalorder %v2737_v42, 4 }
  0xb9   : > { %v1198_v3 = vor.u32 %v1197_v24, %v1196_v44  ;;  %v1895_v31 = vadd.s32 4294967294, %v950_v30  ;;  %v1111_v62 = vadd.s32 536870912, %v1110_v48  ;;  %v2760_v50 = vor.u32 %v1185_v43, %v1184_v14 }
  0xba   : > { %vm1199_vm12 = vcmp.lt.s32.totalorder %v2737_v42, 1  ;;  %v661_v33 = vsel %vm2621_vm11, 0, %v659_v27  ;;  %vm1201_vm13 = vcmp.lt.s32.totalorder %v2737_v42, 3  ;;  %v1208_v5 = vsel %vm1202_vm7, %v1195_v2, 920167782 }
  0xbb   : > { %v2768_v12 = vshll.u32 %v1175_v47, 8  ;;  %v665_v8 = vmul.f32 %v664_v19, %v2674_v26  ;;  %v672_v60 = vmul.f32 %v671_v59, %v2674_v26  ;;  %v813_v49 = vsub.s32 4, %v2526_v35 }
  0xbc   : > { %v2773_v6 = vshrl.u32 %v1111_v62, 30  ;;  %v810_v58 = vmul.f32 %v809_v34, %v807_v39  ;;  %vm1200_vm14 = vcmp.lt.s32.totalorder %v2737_v42, 2  ;;  %v1211_v54 = vsel %vm1199_vm12, %v2755_v61, %v2757_v51 }
  0xbd   : > { %v1212_v27 = vsel %vm1202_vm7, %v1198_v3, 1326507024  ;;  %vm1896_vm11 = vcmp.lt.s32.totalorder %v1895_v31, 0  ;;  %v1207_v59 = vsel %vm1199_vm12, %v2760_v50, %v2755_v61  ;;  %v1209_v20 = vsel %vm1201_vm13, %v2757_v51, %v1208_v5 }
  0xbe   : > { %v1113_v19 = vshll.u32 %v2773_v6, 30  ;;  %v2790_v36 = vadd.s32 3, %v661_v33  ;;  %v1213_v55 = vsel %vm1201_vm13, %v1195_v2, %v1212_v27  ;;  %v1216_v21 = vand.u32 65535, %v2768_v12 }
  0xbf   : > { %v1217_v0 = vshrl.u32 %v2768_v12, 16  ;;  %v2796_v40 = vadd.f32 -0.4999988, %v665_v8  ;;  %v2801_v30 = vsel %vm691_vm8, %v813_v49, %v2526_v35  ;;  %v1214_v43 = vsel %vm1200_vm14, %v1211_v54, %v1213_v55 }
  0xc0   : > { %v2803_v14 = vsub.s32 %v1110_v48, %v1113_v19  ;;  %v2807_v41 = vsel %vm1896_vm11, 0, %v1895_v31  ;;  %v1210_v53 = vsel %vm1200_vm14, %v1207_v59, %v1209_v20  ;;  %v1218_v47 = vand.u32 65535, %v1214_v43 }
  0xc1   : > { %v1219_v44 = vshrl.u32 %v1214_v43, 16  ;;  %v2811_v24 = vadd.f32 -0.16666654, %v672_v60  ;;  %v811_v39 = vxor.u32 2147483648, %v810_v58  ;;  %v2817_v34 = vmul.f32 %v2130_v15, %v2722_v38 }
  0xc2   : > { %vm1115_vm9 = vcmp.lt.s32.totalorder %v2803_v14, 0  ;;  %v1116_v35 = vsub.s32 0, %v2803_v14  ;;  %v1220_v48 = vmul.u32 %v1218_v47, %v1216_v21  ;;  %v2819_v3 = vmul.u32 %v1218_v47, %v1217_v0 }
  0xc3   : > { %v1221_v2 = vmul.u32 %v1219_v44, %v1216_v21  ;;  %v958_v31 = vsub.s32 4294967266, %v2807_v41  ;;  %v1240_v33 = vand.u32 65535, %v1210_v53  ;;  %v1241_v5 = vshrl.u32 %v1210_v53, 16 }
  0xc4   : > { %v1117_v62 = vsel %vm1115_vm9, %v1116_v35, %v2803_v14  ;;  %v938_v8 = vadd.s32 %v2573_v45, %v2571_v22  ;;  %v1223_v49 = vmul.u32 %v1219_v44, %v1217_v0  ;;  %v812_v15 = vsel %vm691_vm8, %v811_v39, %v810_v58 }
  0xc5   : > { %v1118_v60 = vclz %v1117_v62  ;;  %v1224_v54 = vshll.u32 %v1221_v2, 16  ;;  %v954_v27 = vsub.s32 32, %v2807_v41  ;;  %v1226_v19 = vshll.u32 %v2819_v3, 16 }
  0xc6   : > { %v1243_v59 = vmul.u32 %v1241_v5, %v1216_v21  ;;  %v955_v20 = vshll.u32 %v2700_v63, %v2807_v41  ;;  %v3485_v53 = vand.u32 2147483647, %v2140_v18  ;;  %v959_v45 = vadd.s32 127, %v958_v31 }
  0xc7   : > { %v1898_v55 = vadd.s32 4294967294, %v1118_v60  ;;  %vm1228_vm10 = vc.u32 %v1220_v48, %v1224_v54  ;;  %v1230_v43 = vadd.s32 %v1224_v54, %v1220_v48  ;;  %v1106_v58 = vadd.s32 %v2719_v10, %v2717_v4 }
  0xc8   : > { %vm2833_vm6 = vcmp.le.f32.partialorder %v3485_v53, 0.7853982  ;;  %v1229_v47 = vsel %vm1228_vm10, 1, %v3470_v37  ;;  %v1244_v44 = vmul.u32 %v1240_v33, %v1217_v0  ;;  %v1183_v63 = vshrl.u32 %v3463_v1, %v2729_v28 }
  0xc9   : > { %vm1899_vm15 = vcmp.lt.s32.totalorder %v1898_v55, 0  ;;  %v1231_v41 = vadd.s32 %v1229_v47, %v1223_v49  ;;  %vm1232_vm5 = vc.u32 %v1230_v43, %v1226_v19  ;;  %v1242_v48 = vmul.u32 %v1240_v33, %v1216_v21 }
  0xca   : > { %v1121_v39 = vsel %vm1899_vm15, 0, %v1898_v55  ;;  %v1233_v35 = vsel %vm1232_vm5, 1, %v3470_v37  ;;  %v1246_v62 = vshll.u32 %v1243_v59, 16  ;;  %v1225_v31 = vshrl.u32 %v1221_v2, 16 }
  0xcb   : > { %v1122_v60 = vsub.s32 32, %v1121_v39  ;;  %v1126_v54 = vsub.s32 4294967266, %v1121_v39  ;;  %v1235_v53 = vadd.s32 %v1233_v35, %v1231_v41  ;;  %v956_v13 = vshrl.u32 %v938_v8, %v954_v27 }
  0xcc   : > { %v960_v4 = vshll.u32 %v959_v45, 23  ;;  %v1245_v10 = vmul.u32 %v1241_v5, %v1217_v0  ;;  %v1248_v38 = vshll.u32 %v1244_v44, 16  ;;  %v1123_v23 = vshll.u32 %v2803_v14, %v1121_v39 }
  0xcd   : > { %v1124_v11 = vshrl.u32 %v1106_v58, %v1122_v60  ;;  %v1127_v16 = vadd.s32 127, %v1126_v54  ;;  %v1203_v28 = vsel %vm1199_vm12, %v1183_v63, %v2760_v50  ;;  %v1204_v21 = vsel %vm1202_vm7, %v2757_v51, 2102212464 }
  0xce   : > { %vm1250_vm8 = vc.u32 %v1242_v48, %v1246_v62  ;;  %v1252_v33 = vadd.s32 %v1246_v62, %v1242_v48  ;;  %v1325_v2 = vand.u32 2139095040, %v2817_v34  ;;  %v1227_v0 = vshrl.u32 %v2819_v3, 16 }
  0xcf   : > { %v1128_v8 = vshll.u32 %v1127_v16, 23  ;;  %v1236_v5 = vadd.s32 %v1235_v53, %v1225_v31  ;;  %v1251_v14 = vsel %vm1250_vm8, 1, %v3470_v37  ;;  %v1247_v49 = vshrl.u32 %v1243_v59, 16 }
  0xd0   : > { %v1253_v27 = vadd.s32 %v1251_v14, %v1245_v10  ;;  %vm1254_vm11 = vc.u32 %v1252_v33, %v1248_v38  ;;  %v1326_v19 = vshrl.u32 %v1325_v2, 23  ;;  %v1125_v55 = vor.u32 %v1124_v11, %v1123_v23 }
  0xd1   : > { %v1129_v50 = vor.u32 4788187, %v1128_v8  ;;  %v1205_v51 = vsel %vm1201_vm13, %v2755_v61, %v1204_v21  ;;  %v1255_v43 = vsel %vm1254_vm11, 1, %v3470_v37  ;;  %v674_v16 = vmul.f32 %v2811_v24, %v2674_v26 }
  0xd2   : > { %v1249_v45 = vshrl.u32 %v1244_v44, 16  ;;  %v1257_v3 = vadd.s32 %v1255_v43, %v1253_v27  ;;  %v1903_v58 = vadd.s32 4294967169, %v1326_v19  ;;  %v2862_v59 = vsel %vm2833_vm6, %v2140_v18, %v812_v15 }
  0xd3   : > { %v957_v47 = vor.u32 %v956_v13, %v955_v20  ;;  %v2864_v11 = vadd.s32 %v1236_v5, %v1227_v0  ;;  %v2866_v23 = vadd.s32 %v1252_v33, %v1248_v38  ;;  %v961_v63 = vor.u32 4788187, %v960_v4 }
  0xd4   : > { %v1206_v61 = vsel %vm1200_vm14, %v1203_v28, %v1205_v51  ;;  %v1258_v41 = vadd.s32 %v1257_v3, %v1247_v49  ;;  %v1332_v39 = vadd.s32 1, %v1903_v58  ;;  %v667_v24 = vmul.f32 %v2796_v40, %v2674_v26 }
  0xd5   : > { %v816_v44 = vsel %vm2833_vm6, 0, %v2801_v30  ;;  %v1130_v15 = vand.u32 2147483647, %v1129_v50  ;;  %v1132_v35 = vcvt.s32.f32 %v1125_v55  ;;  %v675_v13 = vadd.f32 1.0, %v674_v16 }
  0xd6   : > { %v2877_v38 = vmul.f32 %v2862_v59, %v2862_v59  ;;  %v1259_v20 = vadd.s32 %v1258_v41, %v1249_v45  ;;  %vm1333_vm7 = vcmp.gt.s32.totalorder %v1332_v39, 0  ;;  %v964_v42 = vcvt.s32.f32 %v957_v47 }
  0xd7   : > { %v1260_v48 = vmul.u32 %v2768_v12, %v1206_v61  ;;  %vm1262_vm12 = vc.u32 %v2864_v11, %v2866_v23  ;;  %v1334_v26 = vsel %vm1333_vm7, %v1332_v39, 0  ;;  %v962_v40 = vand.u32 2147483647, %v961_v63 }
  0xd8   : > { %v1263_v62 = vadd.s32 1, %v1259_v20  ;;  %v1322_v30 = vand.u32 2147483647, %v2817_v34  ;;  %v1336_v22 = vand.u32 31, %v1334_v26  ;;  %v1133_v60 = vmul.f32 %v1132_v35, %v1130_v15 }
  0xd9   : > { %v2884_v54 = vand.u32 3, %v2790_v36  ;;  %vm846_vm13 = vcmp.lt.s32.totalorder %v2150_v25, 0  ;;  %v2889_v4 = vadd.f32 1.0, %v667_v24  ;;  %v2892_v12 = vmul.f32 %v675_v13, %v2657_v56 }
  0xda   : > { %v1264_v31 = vsel %vm1262_vm12, %v1263_v62, %v1259_v20  ;;  %v2887_v53 = vsub.s32 32, %v1336_v22  ;;  %v833_v10 = vadd.s32 3, %v816_v44  ;;  %v818_v21 = vmul.f32 -0.001358992, %v2877_v38 }
  0xdb   : > { %v1265_v28 = vadd.s32 %v1264_v31, %v1260_v48  ;;  %v825_v33 = vmul.f32 -0.00019511016, %v2877_v38  ;;  %v3488_v2 = vand.u32 2147483647, %v2150_v25  ;;  %v965_v8 = vmul.f32 %v964_v42, %v962_v40 }
  0xdc   : > { %v1329_v0 = vand.u32 8388607, %v1322_v30  ;;  %vm1014_vm9 = vcmp.lt.s32.totalorder %v2517_v17, 0  ;;  %v1134_v56 = vxor.u32 2147483648, %v1133_v60  ;;  %v1342_v14 = vshll.u32 %v3464_v52, %v1336_v22 }
  0xdd   : > { %vm2898_vm14 = vcmp.le.f32.partialorder %v3488_v2, 0.7853982  ;;  %v1266_v5 = vadd.s32 536870912, %v1265_v28  ;;  %v1343_v49 = vshrl.u32 %v3476_v32, %v2887_v53  ;;  %v1345_v27 = vshll.u32 %v3476_v32, %v1336_v22 }
  0xde   : > { %v1346_v19 = vshrl.u32 %v3477_v46, %v2887_v53  ;;  %v1348_v55 = vshll.u32 %v3477_v46, %v1336_v22  ;;  %v3491_v50 = vand.u32 2147483647, %v2517_v17  ;;  %v2920_v16 = vshrl.u32 %v1334_v26, 5 }
  0xdf   : > { %v2918_v43 = vshrl.u32 %v1266_v5, 30  ;;  %v1349_v45 = vshrl.u32 %v3478_v7, %v2887_v53  ;;  %v966_v3 = vxor.u32 2147483648, %v965_v8  ;;  %v1330_v32 = vor.u32 8388608, %v1329_v0 }
  0xe0   : > { %vm2914_vm10 = vcmp.le.f32.partialorder %v3491_v50, 0.7853982  ;;  %v1351_v58 = vshll.u32 %v3478_v7, %v1336_v22  ;;  %v1352_v46 = vshrl.u32 %v3479_v9, %v2887_v53  ;;  %v1135_v47 = vsel %vm1014_vm9, %v1134_v56, %v1133_v60 }
  0xe1   : > { %v1268_v63 = vshll.u32 %v2918_v43, 30  ;;  %v1339_v61 = vshll.u32 %v3463_v1, %v1336_v22  ;;  %v1340_v41 = vshrl.u32 %v3464_v52, %v2887_v53  ;;  %v2933_v39 = vor.u32 %v1343_v49, %v1342_v14 }
  0xe2   : > { %v2935_v24 = vor.u32 %v1346_v19, %v1345_v27  ;;  %v1350_v44 = vor.u32 %v1349_v45, %v1348_v55  ;;  %v1353_v15 = vor.u32 %v1352_v46, %v1351_v58  ;;  %v819_v7 = vadd.f32 0.041655596, %v818_v21 }
  0xe3   : > { %v826_v35 = vadd.f32 0.008332121, %v825_v33  ;;  %v1269_v13 = vsub.s32 %v1265_v28, %v1268_v63  ;;  %vm1354_vm6 = vcmp.lt.s32.totalorder %v2920_v16, 1  ;;  %v967_v9 = vsel %vm846_vm13, %v966_v3, %v965_v8 }
  0xe4   : > { %v2943_v20 = vsel %vm2914_vm10, %v2517_v17, %v1135_v47  ;;  %vm1357_vm15 = vcmp.lt.s32.totalorder %v2920_v16, 4  ;;  %v2946_v52 = vshll.u32 %v1330_v32, 8  ;;  %v2948_v48 = vor.u32 %v1340_v41, %v1339_v61 }
  0xe5   : > { %vm1270_vm5 = vcmp.lt.s32.totalorder %v1269_v13, 0  ;;  %v1271_v42 = vsub.s32 0, %v1269_v13  ;;  %vm1356_vm8 = vcmp.lt.s32.totalorder %v2920_v16, 3  ;;  %vm1355_vm11 = vcmp.lt.s32.totalorder %v2920_v16, 2 }
  0xe6   : > { %v1363_v26 = vsel %vm1357_vm15, %v1350_v44, 920167782  ;;  %v1366_v40 = vsel %vm1354_vm6, %v2933_v39, %v2935_v24  ;;  %v1367_v62 = vsel %vm1357_vm15, %v1353_v15, 1326507024  ;;  %v820_v22 = vmul.f32 %v819_v7, %v2877_v38 }
  0xe7   : > { %v827_v60 = vmul.f32 %v826_v35, %v2877_v38  ;;  %v2965_v31 = vsel %vm2898_vm14, %v2150_v25, %v967_v9  ;;  %v1272_v28 = vsel %vm1270_vm5, %v1271_v42, %v1269_v13  ;;  %v1368_v33 = vsel %vm1356_vm8, %v1350_v44, %v1367_v62 }
  0xe8   : > { %v1273_v21 = vclz %v1272_v28  ;;  %v1371_v2 = vand.u32 65535, %v2946_v52  ;;  %v1372_v8 = vshrl.u32 %v2946_v52, 16  ;;  %v2973_v0 = vmul.f32 %v2943_v20, %v2943_v20 }
  0xe9   : > { %v1362_v56 = vsel %vm1354_vm6, %v2948_v48, %v2933_v39  ;;  %v1364_v5 = vsel %vm1356_vm8, %v2935_v24, %v1363_v26  ;;  %v1369_v14 = vsel %vm1355_vm11, %v1366_v40, %v1368_v33  ;;  %v2984_v49 = vand.u32 3, %v833_v10 }
  0xea   : > { %v1901_v27 = vadd.s32 4294967294, %v1273_v21  ;;  %v1373_v19 = vand.u32 65535, %v1369_v14  ;;  %v1374_v55 = vshrl.u32 %v1369_v14, 16  ;;  %v682_v50 = vxor.u32 2147483648, %v2892_v12 }
  0xeb   : > { %v685_v45 = vxor.u32 2147483648, %v2889_v4  ;;  %v828_v3 = vadd.f32 -0.16666654, %v827_v60  ;;  %v2990_v32 = vmul.f32 %v2965_v31, %v2965_v31  ;;  %v1261_v58 = vadd.s32 %v2866_v23, %v2864_v11 }
  0xec   : > { %vm1902_vm7 = vcmp.lt.s32.totalorder %v1901_v27, 0  ;;  %v1365_v10 = vsel %vm1355_vm11, %v1362_v56, %v1364_v5  ;;  %v1376_v46 = vmul.u32 %v1374_v55, %v1371_v2  ;;  %v2996_v47 = vadd.f32 -0.4999988, %v820_v22 }
  0xed   : > { %v1148_v63 = vmul.f32 -0.00019511016, %v2973_v0  ;;  %v1276_v61 = vsel %vm1902_vm7, 0, %v1901_v27  ;;  %v2999_v41 = vmul.u32 %v1373_v19, %v1372_v8  ;;  %v1375_v35 = vmul.u32 %v1373_v19, %v1371_v2 }
  0xee   : > { %v1277_v44 = vsub.s32 32, %v1276_v61  ;;  %v1278_v15 = vshll.u32 %v1269_v13, %v1276_v61  ;;  %v1281_v7 = vsub.s32 4294967266, %v1276_v61  ;;  %v3002_v9 = vmul.f32 %v828_v3, %v2877_v38 }
  0xef   : > { %v3005_v11 = vmul.f32 -0.00019511016, %v2990_v32  ;;  %v1395_v23 = vand.u32 65535, %v1365_v10  ;;  %v1396_v42 = vshrl.u32 %v1365_v10, 16  ;;  %v1378_v62 = vmul.u32 %v1374_v55, %v1372_v8 }
  0xf0   : > { %v1279_v26 = vshrl.u32 %v1261_v58, %v1277_v44  ;;  %v1282_v40 = vadd.s32 127, %v1281_v7  ;;  %v1379_v22 = vshll.u32 %v1376_v46, 16  ;;  %v1141_v60 = vmul.f32 -0.001358992, %v2973_v0 }
  0xf1   : > { %v1149_v28 = vadd.f32 0.008332121, %v1148_v63  ;;  %vm1169_vm12 = vcmp.lt.s32.totalorder %v2591_v29, 0  ;;  %v1380_v13 = vshrl.u32 %v1376_v46, 16  ;;  %v1381_v21 = vshll.u32 %v2999_v41, 16 }
  0xf2   : > { %v1280_v33 = vor.u32 %v1279_v26, %v1278_v15  ;;  %v1283_v56 = vshll.u32 %v1282_v40, 23  ;;  %vm1383_vm5 = vc.u32 %v1375_v35, %v1379_v22  ;;  %v1385_v5 = vadd.s32 %v1379_v22, %v1375_v35 }
  0xf3   : > { %vm684_vm7 = vcmp.eq.s32.totalorder %v2884_v54, 2  ;;  %v1384_v14 = vsel %vm1383_vm5, 1, %v3470_v37  ;;  %v1397_v27 = vmul.u32 %v1395_v23, %v1371_v2  ;;  %v1398_v19 = vmul.u32 %v1396_v42, %v1371_v2 }
  0xf4   : > { %v1399_v55 = vmul.u32 %v1395_v23, %v1372_v8  ;;  %v1284_v3 = vor.u32 4788187, %v1283_v56  ;;  %v1287_v58 = vcvt.s32.f32 %v1280_v33  ;;  %v1386_v10 = vadd.s32 %v1384_v14, %v1378_v62 }
  0xf5   : > { %vm1387_vm4 = vc.u32 %v1385_v5, %v1381_v21  ;;  %v1400_v46 = vmul.u32 %v1396_v42, %v1372_v8  ;;  %v1401_v61 = vshll.u32 %v1398_v19, 16  ;;  %v3494_v15 = vand.u32 2147483647, %v2591_v29 }
  0xf6   : > { %v1388_v63 = vsel %vm1387_vm4, 1, %v3470_v37  ;;  %v1403_v44 = vshll.u32 %v1399_v55, 16  ;;  %v1285_v35 = vand.u32 2147483647, %v1284_v3  ;;  %v1338_v2 = vshrl.u32 %v3463_v1, %v2887_v53 }
  0xf7   : > { %vm3015_vm3 = vcmp.le.f32.partialorder %v3494_v15, 0.7853982  ;;  %v1390_v23 = vadd.s32 %v1388_v63, %v1386_v10  ;;  %v1142_v26 = vadd.f32 0.041655596, %v1141_v60  ;;  %v1359_v40 = vsel %vm1357_vm15, %v2935_v24, 2102212464 }
  0xf8   : > { %vm1405_vm4 = vc.u32 %v1397_v27, %v1401_v61  ;;  %v1407_v8 = vadd.s32 %v1401_v61, %v1397_v27  ;;  %v1288_v42 = vmul.f32 %v1287_v58, %v1285_v35  ;;  %v1382_v62 = vshrl.u32 %v2999_v41, 16 }
  0xf9   : > { %v1391_v22 = vadd.s32 %v1390_v23, %v1380_v13  ;;  %v1406_v21 = vsel %vm1405_vm4, 1, %v3470_v37  ;;  %v1150_v33 = vmul.f32 %v1149_v28, %v2973_v0  ;;  %v1402_v56 = vshrl.u32 %v1398_v19, 16 }
  0xfa   : > { %v1408_v5 = vadd.s32 %v1406_v21, %v1400_v46  ;;  %vm1409_vm5 = vc.u32 %v1407_v8, %v1403_v44  ;;  %v1289_v1 = vxor.u32 2147483648, %v1288_v42  ;;  %v1358_v53 = vsel %vm1354_vm6, %v1338_v2, %v2948_v48  ;;  %v3497_v21 = vld [vmem:[#allocation4_spill] sm:$0xff] }
  0xfb   : > { %v1360_v24 = vsel %vm1356_vm8, %v2933_v39, %v1359_v40  ;;  %v1410_v60 = vsel %vm1409_vm5, 1, %v3470_v37  ;;  %vm681_vm15 = vcmp.eq.s32.totalorder %v2884_v54, 0  ;;  %v1136_v41 = vsub.s32 4, %v2773_v6 }
  0xfc   : > { %v1143_v28 = vmul.f32 %v1142_v26, %v2973_v0  ;;  %v1404_v13 = vshrl.u32 %v1399_v55, 16  ;;  %v1412_v14 = vadd.s32 %v1410_v60, %v1408_v5  ;;  %v1290_v27 = vsel %vm1169_vm12, %v1289_v1, %v1288_v42 }
  0xfd   : > { %v1291_v19 = vsub.s32 4, %v2918_v43  ;;  %v3040_v48 = vadd.s32 %v1391_v22, %v1382_v62  ;;  %v3042_v3 = vadd.s32 %v1407_v8, %v1403_v44  ;;  %v1151_v39 = vadd.f32 -0.16666654, %v1150_v33 }
  0xfe   : > { %v3047_v37 = vsel %vm3015_vm3, %v2591_v29, %v1290_v27  ;;  %v1361_v58 = vsel %vm1355_vm11, %v1358_v53, %v1360_v24  ;;  %v1413_v55 = vadd.s32 %v1412_v14, %v1402_v56  ;;  %v686_v10 = vsel %vm684_vm7, %v685_v45, %v2892_v12 }
  0xff   : > { %v822_v63 = vmul.f32 %v2996_v47, %v2877_v38  ;;  %v830_v46 = vadd.f32 1.0, %v3002_v9  ;;  %v1295_v61 = vmul.f32 %v3047_v37, %v3047_v37  ;;  %v973_v44 = vmul.f32 -0.001358992, %v2990_v32 }
 0x100   : > { %v981_v16 = vadd.f32 0.008332121, %v3005_v11  ;;  %v1137_v15 = vsel %vm1014_vm9, %v1136_v41, %v2773_v6  ;;  %v1414_v35 = vadd.s32 %v1413_v55, %v1404_v13  ;;  %vm680_vm6 = vcmp.lt.s32.totalorder %v2884_v54, 2 }
 0x101   : > { %vm839_vm8 = vcmp.eq.s32.totalorder %v2984_v49, 2  ;;  %v1296_v45 = vmul.f32 -0.001358992, %v1295_v61  ;;  %v1303_v38 = vmul.f32 -0.00019511016, %v1295_v61  ;;  %v1415_v47 = vmul.u32 %v2946_v52, %v1361_v58 }
 0x102   : > { %vm1417_vm11 = vc.u32 %v3040_v48, %v3042_v3  ;;  %vm836_vm7 = vcmp.eq.s32.totalorder %v2984_v49, 0  ;;  %v1144_v9 = vadd.f32 -0.4999988, %v1143_v28  ;;  %v1152_v11 = vmul.f32 %v1151_v39, %v2973_v0 }
 0x103   : > { %v1292_v6 = vsel %vm1169_vm12, %v1291_v19, %v2918_v43  ;;  %v1418_v2 = vadd.s32 1, %v1414_v35  ;;  %v968_v23 = vsub.s32 4, %v2684_v57  ;;  %v1139_v26 = vsel %vm2914_vm10, 0, %v1137_v15 }
 0x104   : > { %v1297_v40 = vadd.f32 0.041655596, %v1296_v45  ;;  %v1304_v52 = vadd.f32 0.008332121, %v1303_v38  ;;  %v823_v8 = vadd.f32 1.0, %v822_v63  ;;  %v831_v42 = vmul.f32 %v830_v46, %v2862_v59 }
 0x105   : > { %v974_v62 = vadd.f32 0.041655596, %v973_v44  ;;  %v1419_v22 = vsel %vm1417_vm11, %v1418_v2, %v1414_v35  ;;  %vm677_vm9 = vweird.f32 %v3497_v21  ;;  %v1294_v33 = vsel %vm3015_vm3, 0, %v1292_v6 }
 0x106   : > { %v1298_v56 = vmul.f32 %v1297_v40, %v1295_v61  ;;  %v1305_v43 = vmul.f32 %v1304_v52, %v1295_v61  ;;  %v1420_v5 = vadd.s32 %v1419_v22, %v1415_v47  ;;  %v982_v1 = vmul.f32 %v981_v16, %v2990_v32 }
 0x107   : > { %v1145_v51 = vmul.f32 %v1144_v9, %v2973_v0  ;;  %v1153_v53 = vadd.f32 1.0, %v1152_v11  ;;  %v1156_v24 = vadd.s32 3, %v1139_v26  ;;  %v683_v59 = vsel %vm681_vm15, %v2889_v4, %v682_v50 }
 0x108   : > { %v1299_v60 = vadd.f32 -0.4999988, %v1298_v56  ;;  %v1306_v41 = vadd.f32 -0.16666654, %v1305_v43  ;;  %v1421_v28 = vadd.s32 536870912, %v1420_v5  ;;  %v837_v7 = vxor.u32 2147483648, %v831_v42 }
 0x109   : > { %v840_v13 = vxor.u32 2147483648, %v823_v8  ;;  %v969_v14 = vsel %vm846_vm13, %v968_v23, %v2684_v57  ;;  %v1311_v27 = vadd.s32 3, %v1294_v33  ;;  %vm832_vm3 = vweird.f32 %v2140_v18 }
 0x10a   : > { %v975_v0 = vmul.f32 %v974_v62, %v2990_v32  ;;  %v1300_v19 = vmul.f32 %v1299_v60, %v1295_v61  ;;  %v1307_v12 = vmul.f32 %v1306_v41, %v1295_v61  ;;  %v3095_v39 = vshrl.u32 %v1421_v28, 30 }
 0x10b   : > { %v983_v58 = vadd.f32 -0.16666654, %v982_v1  ;;  %v1146_v4 = vadd.f32 1.0, %v1145_v51  ;;  %v1154_v50 = vmul.f32 %v1153_v53, %v2943_v20  ;;  %v1157_v55 = vand.u32 3, %v1156_v24 }
 0x10c   : > { %vm835_vm10 = vcmp.lt.s32.totalorder %v2984_v49, 2  ;;  %v1301_v63 = vadd.f32 1.0, %v1300_v19  ;;  %v1308_v46 = vadd.f32 1.0, %v1307_v12  ;;  %v1423_v57 = vshll.u32 %v3095_v39, 30  ;;  %v1958_v49 = vld [vmem:[%s3420_s2 + $0x18] sm:$0xff] }
 0x10d   : > { %v687_v44 = vsel %vm680_vm6, %v683_v59, %v686_v10  ;;  %v841_v16 = vsel %vm839_vm8, %v840_v13, %v831_v42  ;;  %v971_v61 = vsel %vm2898_vm14, 0, %v969_v14  ;;  %v1312_v15 = vand.u32 3, %v1311_v27 }
 0x10e   : > { %v838_v20 = vsel %vm836_vm7, %v823_v8, %v837_v7  ;;  %v976_v35 = vadd.f32 -0.4999988, %v975_v0  ;;  %v1309_v45 = vmul.f32 %v1308_v46, %v3047_v37  ;;  %v1424_v38 = vsub.s32 %v1420_v5, %v1423_v57 }
 0x10f   : > { %v984_v47 = vmul.f32 %v983_v58, %v2990_v32  ;;  %v1160_v9 = vxor.u32 2147483648, %v1154_v50  ;;  %vm1162_vm13 = vcmp.eq.s32.totalorder %v1157_v55, 2  ;;  %v1163_v54 = vxor.u32 2147483648, %v1146_v4  ;;  %v3498_v58 = vld [vmem:[#allocation2_spill] sm:$0xff] }
 0x110   : > { %v1315_v10 = vxor.u32 2147483648, %v1309_v45  ;;  %v1318_v11 = vxor.u32 2147483648, %v1301_v63  ;;  %vm1425_vm12 = vcmp.lt.s32.totalorder %v1424_v38, 0  ;;  %v1426_v6 = vsub.s32 0, %v1424_v38 }
 0x111   : > { %v688_v36 = vsel %vm677_vm9, nan, %v687_v44  ;;  %vm1159_vm14 = vcmp.eq.s32.totalorder %v1157_v55, 0  ;;  %vm1314_vm4 = vcmp.eq.s32.totalorder %v1312_v15, 0  ;;  %vm1317_vm5 = vcmp.eq.s32.totalorder %v1312_v15, 2 }
 0x112   : > { %v842_v2 = vsel %vm835_vm10, %v838_v20, %v841_v16  ;;  %v977_v37 = vmul.f32 %v976_v35, %v2990_v32  ;;  %v988_v23 = vadd.s32 3, %v971_v61  ;;  %v1427_v26 = vsel %vm1425_vm12, %v1426_v6, %v1424_v38 }
 0x113   : > { %v985_v40 = vadd.f32 1.0, %v984_v47  ;;  %vm1158_vm15 = vcmp.lt.s32.totalorder %v1157_v55, 2  ;;  %v1164_v52 = vsel %vm1162_vm13, %v1163_v54, %v1154_v50  ;;  %v1428_v8 = vclz %v1427_v26  ;;  %v3170_v26 = vld [vmem:[%s3420_s2 + $0x8] sm:$0xff] }
 0x114   : > { %v1161_v42 = vsel %vm1159_vm14, %v1146_v4, %v1160_v9  ;;  %vm1313_vm6 = vcmp.lt.s32.totalorder %v1312_v15, 2  ;;  %v1316_v62 = vsel %vm1314_vm4, %v1301_v63, %v1315_v10  ;;  %v1319_v22 = vsel %vm1317_vm5, %v1318_v11, %v1309_v45  ;;  %v3502_v10 = vld [vmem:[#allocation3_spill] sm:$0xff] }
 0x115   : > { %v843_v21 = vsel %vm832_vm3, nan, %v842_v2  ;;  %v1904_v33 = vadd.s32 4294967294, %v1428_v8  ;;  %v999_v56 = vmul.f32 %v688_v36, %v688_v36  ;;  %v3121_v32 = vperm.slane %v1958_v49, 1 }
 0x116   : > { %vm1155_vm8 = vweird.f32 %v2517_v17  ;;  %vm1310_vm11 = vweird.f32 %v2591_v29  ;;  %v1165_v43 = vsel %vm1158_vm15, %v1161_v42, %v1164_v52  ;;  %v1320_v5 = vsel %vm1313_vm6, %v1316_v62, %v1319_v22  ;;  %v3503_v52 = vld [vmem:[#allocation7_spill] sm:$0xff] }
 0x117   : > { %v1416_v1 = vadd.s32 %v3042_v3, %v3040_v48  ;;  %vm1905_vm7 = vcmp.lt.s32.totalorder %v1904_v33, 0  ;;  %v978_v18 = vadd.f32 1.0, %v977_v37  ;;  %v986_v51 = vmul.f32 %v985_v40, %v2965_v31 }
 0x118   : > { %v989_v53 = vand.u32 3, %v988_v23  ;;  %v1431_v24 = vsel %vm1905_vm7, 0, %v1904_v33  ;;  %v1003_v28 = vmul.f32 %v3121_v32, %v999_v56  ;;  %v1166_v17 = vsel %vm1155_vm8, nan, %v1165_v43 }
 0x119   : > { %v1432_v59 = vsub.s32 32, %v1431_v24  ;;  %v1433_v60 = vshll.u32 %v1424_v38, %v1431_v24  ;;  %v1436_v41 = vsub.s32 4294967266, %v1431_v24  ;;  %v1321_v7 = vsel %vm1310_vm11, nan, %v1320_v5  ;;  %v3501_v38 = vld [vmem:[#allocation6_spill] sm:$0xff] }
 0x11a   : > { %v1446_v29 = vsub.s32 4, %v3095_v39  ;;  %v1000_v13 = vmul.f32 %v843_v21, %v843_v21  ;;  %v992_v3 = vxor.u32 2147483648, %v986_v51  ;;  %vm994_vm9 = vcmp.eq.s32.totalorder %v989_v53, 2 }
 0x11b   : > { %v1434_v14 = vshrl.u32 %v1416_v1, %v1432_v59  ;;  %v1437_v48 = vadd.s32 127, %v1436_v41  ;;  %v995_v27 = vxor.u32 2147483648, %v978_v18  ;;  %vm1324_vm3 = vcmp.lt.s32.totalorder %v2817_v34, 0 }
 0x11c   : > { %v1477_v19 = vmul.f32 %v1166_v17, %v1166_v17  ;;  %v1478_v12 = vmul.f32 %v1321_v7, %v1321_v7  ;;  %vm991_vm10 = vcmp.eq.s32.totalorder %v989_v53, 0  ;;  %v1006_v4 = vadd.f32 %v1003_v28, %v3498_v58 }
 0x11d   : > { %v1435_v31 = vor.u32 %v1434_v14, %v1433_v60  ;;  %v1438_v0 = vshll.u32 %v1437_v48, 23  ;;  %v1447_v50 = vsel %vm1324_vm3, %v1446_v29, %v3095_v39  ;;  %v1486_v55 = vlaneseq }
 0x11e   : > { %v1004_v63 = vmul.f32 %v3121_v32, %v1000_v13  ;;  %v1480_v44 = vmul.f32 %v1477_v19, %v3121_v32  ;;  %vm990_vm13 = vcmp.lt.s32.totalorder %v989_v53, 2  ;;  %v996_v16 = vsel %vm994_vm9, %v995_v27, %v986_v51 }
 0x11f   : > { %v1439_v46 = vor.u32 4788187, %v1438_v0  ;;  %v1442_v57 = vcvt.s32.f32 %v1435_v31  ;;  %vm3143_vm12 = vcmp.le.f32.partialorder %v1322_v30, 0.7853982  ;;  %v3147_v15 = vshrl.u32 %v1486_v55, 7  ;;  %v3157_v30 = vld [vmem:[%s3420_s2 + $0x10] sm:$0xff] }
 0x120   : > { %v993_v39 = vsel %vm991_vm10, %v978_v18, %v992_v3  ;;  %v1449_v35 = vsel %vm3143_vm12, 0, %v1447_v50  ;;  %v1481_v45 = vmul.f32 %v1478_v12, %v3121_v32  ;;  %v1483_v47 = vadd.f32 %v1480_v44, %v3501_v38 }
 0x121   : > { %v1440_v20 = vand.u32 2147483647, %v1439_v46  ;;  %vm1492_vm14 = vcmp.lt.s32.totalorder %v3147_v15, 2  ;;  %v1496_v9 = vstv %s1495_s22  ;;  %v1507_v54 = vperm.slane %v1006_v4, 2 }
 0x122   : > { %v3160_v11 = vadd.f32 %v1004_v63, %v3502_v10  ;;  %vm1497_vm4 = vcmp.eq.s32.totalorder %v1496_v9, 1  ;;  %vm1511_vm5 = vcmp.lt.s32.totalorder %v3147_v15, 3  ;;  %vm987_vm15 = vweird.f32 %v2150_v25 }
 0x123   : > { %v1443_v6 = vmul.f32 %v1442_v57, %v1440_v20  ;;  %v997_v36 = vsel %vm990_vm13, %v993_v39, %v996_v16  ;;  %vm1498_vm6 = vmand %vm1497_vm4, %vm1492_vm14  ;;  %v1466_v37 = vadd.s32 3, %v1449_v35  ;;  %v3173_v40 = vperm.slane %v3170_v26, 5 }
 0x124   : > { %v3165_v23 = vsel %vm1498_vm6, %v1507_v54, %v1006_v4  ;;  %vm1514_vm8 = vmand %vm1497_vm4, %vm1511_vm5  ;;  %v3176_v8 = vadd.f32 %v1481_v45, %v3503_v52  ;;  %v1560_v62 = vperm.slane %v3170_v26, 4  ;;  %v1565_v22 = vperm.slane %v3157_v30, 2 }
 0x125   : > { %v1444_v2 = vxor.u32 2147483648, %v1443_v6  ;;  %v3178_v42 = vsel %vm1514_vm8, %v1507_v54, %v1483_v47  ;;  %v1571_v33 = vmul.f32 %v3173_v40, %v3165_v23  ;;  %v3188_v56 = vmul.f32 %v3173_v40, %v3160_v11 }
 0x126   : > { %v3191_v49 = vperm.slane %v3157_v30, 3  ;;  %v998_v43 = vsel %vm987_vm15, nan, %v997_v36  ;;  %v1561_v1 = vmul.f32 %v1560_v62, %v3165_v23  ;;  %v1566_v18 = vmul.f32 %v1565_v22, %v3178_v42 }
 0x127   : > { %v1445_v21 = vsel %vm1324_vm3, %v1444_v2, %v1443_v6  ;;  %v3208_v53 = vand.u32 3, %v1466_v37  ;;  %v1577_v25 = vrot.slane %v1571_v33, 1  ;;  %v1578_v24 = vrot.slane %v3188_v56, 1 }
 0x128   : > { %v3198_v5 = vsel %vm3143_vm12, %v2817_v34, %v1445_v21  ;;  %v1568_v59 = vadd.f32 %v1566_v18, %v1561_v1  ;;  %v1587_v60 = vmul.f32 %v3191_v49, %v3178_v42  ;;  %v3215_v41 = vmul.f32 %v3191_v49, %v3176_v8 }
 0x129   : > { %v1450_v51 = vmul.f32 %v3198_v5, %v3198_v5  ;;  %v3218_v28 = vperm.slane %v3170_v26, 6  ;;  %v3220_v17 = vmul.f32 %v998_v43, %v998_v43  ;;  %v1579_v13 = vsel %vm336_vm0, %v1577_v25, %v1578_v24 }
 0x12a   : > { %v1584_v14 = vadd.f32 %v1579_v13, %v1568_v59  ;;  %v1593_v48 = vrot.slane %v1587_v60, 1  ;;  %v1594_v3 = vrot.slane %v3215_v41, 1  ;;  %v3233_v12 = vperm.slane %v3157_v30, 4 }
 0x12b   : > { %v1451_v7 = vmul.f32 -0.001358992, %v1450_v51  ;;  %v1458_v29 = vmul.f32 -0.00019511016, %v1450_v51  ;;  %v1603_v27 = vmul.f32 %v3218_v28, %v3165_v23  ;;  %v3230_v19 = vmul.f32 %v3218_v28, %v3160_v11 }
 0x12c   : > { %vm1472_vm11 = vcmp.eq.s32.totalorder %v3208_v53, 2  ;;  %v1595_v58 = vsel %vm336_vm0, %v1593_v48, %v1594_v3  ;;  %v3240_v50 = vperm.slane %v3170_v26, 7  ;;  %vm1469_vm7 = vcmp.eq.s32.totalorder %v3208_v53, 0 }
 0x12d   : > { %v1452_v31 = vadd.f32 0.041655596, %v1451_v7  ;;  %v1459_v0 = vadd.f32 0.008332121, %v1458_v29  ;;  %v1609_v4 = vrot.slane %v1603_v27, 2  ;;  %v1600_v46 = vadd.f32 %v1595_v58, %v1584_v14 }
 0x12e   : > { %v1610_v57 = vrot.slane %v3230_v19, 2  ;;  %v1619_v44 = vmul.f32 %v3233_v12, %v3178_v42  ;;  %v3248_v16 = vmul.f32 %v3233_v12, %v3176_v8  ;;  %v1635_v61 = vmul.f32 %v3240_v50, %v3165_v23 }
 0x12f   : > { %v1453_v55 = vmul.f32 %v1452_v31, %v1450_v51  ;;  %v1460_v63 = vmul.f32 %v1459_v0, %v1450_v51  ;;  %v3254_v39 = vmul.f32 %v3240_v50, %v3160_v11  ;;  %vm1468_vm9 = vcmp.lt.s32.totalorder %v3208_v53, 2 }
 0x130   : > { %v1611_v45 = vsel %vm373_vm1, %v1609_v4, %v1610_v57  ;;  %v3261_v38 = vperm.slane %v3157_v30, 5  ;;  %vm1465_vm3 = vweird.f32 %v2817_v34  ;;  %v1625_v9 = vrot.slane %v1619_v44, 2 }
 0x131   : > { %v1454_v20 = vadd.f32 -0.4999988, %v1453_v55  ;;  %v1461_v35 = vadd.f32 -0.16666654, %v1460_v63  ;;  %v1616_v47 = vadd.f32 %v1611_v45, %v1600_v46  ;;  %v1626_v54 = vrot.slane %v3248_v16, 2 }
 0x132   : > { %v1641_v10 = vrot.slane %v1635_v61, 3  ;;  %v1642_v2 = vrot.slane %v3254_v39, 3  ;;  %v1651_v37 = vmul.f32 %v3261_v38, %v3178_v42  ;;  %v3274_v21 = vmul.f32 %v3261_v38, %v3176_v8 }
 0x133   : > { %v1455_v6 = vmul.f32 %v1454_v20, %v1450_v51  ;;  %v1462_v36 = vmul.f32 %v1461_v35, %v1450_v51  ;;  %v1627_v52 = vsel %vm373_vm1, %v1625_v9, %v1626_v54  ;;  %v3277_v33 = vperm.slane %v3157_v30, 0 }
 0x134   : > { %v3280_v43 = vperm.slane %v3157_v30, 6  ;;  %v1632_v51 = vadd.f32 %v1627_v52, %v1616_v47  ;;  %v1643_v25 = vsel %vm410_vm2, %v1641_v10, %v1642_v2  ;;  %v1657_v59 = vrot.slane %v1651_v37, 3 }
 0x135   : > { %v1456_v1 = vadd.f32 1.0, %v1455_v6  ;;  %v1463_v18 = vadd.f32 1.0, %v1462_v36  ;;  %v1658_v60 = vrot.slane %v3274_v21, 3  ;;  %v1667_v7 = vmul.f32 %v3277_v33, %v3165_v23 }
 0x136   : > { %v3290_v29 = vmul.f32 %v3277_v33, %v3160_v11  ;;  %v1648_v48 = vadd.f32 %v1643_v25, %v1632_v51  ;;  %v1683_v27 = vmul.f32 %v3280_v43, %v3178_v42  ;;  %v3305_v4 = vmul.f32 %v3280_v43, %v3176_v8 }
 0x137   : > { %v1464_v13 = vmul.f32 %v1463_v18, %v3198_v5  ;;  %v1473_v14 = vxor.u32 2147483648, %v1456_v1  ;;  %v1659_v31 = vsel %vm410_vm2, %v1657_v59, %v1658_v60  ;;  %v1673_v0 = vrot.slane %v1667_v7, 4 }
 0x138   : > { %v1674_v58 = vrot.slane %v3290_v29, 4  ;;  %v1664_v63 = vadd.f32 %v1659_v31, %v1648_v48  ;;  %v1689_v46 = vrot.slane %v1683_v27, 4  ;;  %vm3504_vm10 = vcmask 1043456   ;;  %v3509_v31 = vld [vmem:[#allocation8_spill] sm:$0xff] }
 0x139   : > { %v1470_v5 = vxor.u32 2147483648, %v1464_v13  ;;  %v1474_v55 = vsel %vm1472_vm11, %v1473_v14, %v1464_v13  ;;  %v1690_v61 = vrot.slane %v3305_v4, 4  ;;  %v3314_v20 = vperm.slane %v3157_v30, 1  ;;  %vm3505_vm13 = vmmov %vm3504_vm10 }
 0x13a   : > { %v1675_v44 = vsel %vm3504_vm10, %v1673_v0, %v1674_v58  ;;  %v3317_v35 = vperm.slane %v3157_v30, 7  ;;  %v1489_v47 = vadd.s32 16, %v3147_v15  ;;  %v1530_v9 = vstv %s3295_s27 }
 0x13b   : > { %v1471_v45 = vsel %vm1469_vm7, %v1456_v1, %v1470_v5  ;;  %v1680_v10 = vadd.f32 %v1675_v44, %v1664_v63  ;;  %v1691_v36 = vsel %vm3505_vm13, %v1689_v46, %v1690_v61  ;;  %v1699_v37 = vmul.f32 %v3314_v20, %v3165_v23 }
 0x13c   : > { %v1475_v6 = vsel %vm1468_vm9, %v1471_v45, %v1474_v55  ;;  %v3332_v52 = vmul.f32 %v3314_v20, %v3160_v11  ;;  %v1715_v18 = vmul.f32 %v3317_v35, %v3178_v42  ;;  %v3340_v53 = vmul.f32 %v3317_v35, %v3176_v8 }
 0x13d   : > { %v1476_v1 = vsel %vm1465_vm3, nan, %v1475_v6  ;;  %v1696_v15 = vadd.f32 %v1691_v36, %v1680_v10  ;;  %v1005_v51 = vmul.f32 %v3121_v32, %v3220_v17  ;;  %v1705_v23 = vrot.slane %v1699_v37, 5  ;;  %v3508_v17 = vld [vmem:[#allocation5_spill] sm:$0xff] }
 0x13e   : > { %v1479_v25 = vmul.f32 %v1476_v1, %v1476_v1  ;;  %v1706_v59 = vrot.slane %v3332_v52, 5  ;;  %vm1528_vm12 = vcmp.ge.s32.totalorder %v1489_v47, 18  ;;  %vm1531_vm14 = vcmp.eq.s32.totalorder %v1530_v9, 1 }
 0x13f   : > { %v1721_v34 = vrot.slane %v1715_v18, 5  ;;  %v1722_v7 = vrot.slane %v3340_v53, 5  ;;  %vm1547_vm4 = vcmp.ge.s32.totalorder %v1489_v47, 19  ;;  %vm3506_vm5 = vcmask 1042432   ;;  %vm1534_vm6 = vmand %vm1531_vm14, %vm1528_vm12 }
 0x140   : > { %v1482_v13 = vmul.f32 %v1479_v25, %v3121_v32  ;;  %v1707_v42 = vsel %vm3506_vm5, %v1705_v23, %v1706_v59  ;;  %vm3507_vm15 = vmmov %vm3506_vm5  ;;  %v1008_v27 = vadd.f32 %v1005_v51, %v3508_v17  ;;  %vm1730_vm8 = vcmask 31744  }
 0x141   : > { %v1712_v14 = vadd.f32 %v1707_v42, %v1696_v15  ;;  %v1723_v48 = vsel %vm3507_vm15, %v1721_v34, %v1722_v7  ;;  %vm1550_vm11 = vmand %vm1531_vm14, %vm1547_vm4  ;;  %v1562_v55 = vmul.f32 %v1560_v62, %v3160_v11  ;;  %v1567_v63 = vmul.f32 %v1565_v22, %v3176_v8 }
 0x142   : > { %v1485_v0 = vadd.f32 %v1482_v13, %v3509_v31  ;;  %vm3512_vm7 = vmmov %vm3506_vm5 }
 0x143   : > { %v1728_v32 = vadd.f32 %v1723_v48, %v1712_v14  ;;  %v1569_v6 = vadd.f32 %v1567_v63, %v1562_v55 }
 0x144   : > { %v1541_v5 = vperm.slane %v1485_v0, 2 }
 0x145   : > { %1731 = vst.msk [vmem:[%s3353_s30] sm:$0xff] %vm1730_vm8, %v1728_v32 }
 0x146   : > { %v1544_v46 = vsel %vm1534_vm6, %v1541_v5, %v1008_v27  ;;  %v1559_v44 = vsel %vm1550_vm11, %v1541_v5, %v1485_v0 }
 0x147   : > { %v1573_v45 = vmul.f32 %v3173_v40, %v1544_v46  ;;  %v1589_v47 = vmul.f32 %v3191_v49, %v1559_v44  ;;  %v1605_v9 = vmul.f32 %v3218_v28, %v1544_v46  ;;  %v1621_v10 = vmul.f32 %v3233_v12, %v1559_v44 }
 0x148   : > { %v1637_v62 = vmul.f32 %v3240_v50, %v1544_v46  ;;  %v1653_v22 = vmul.f32 %v3261_v38, %v1559_v44  ;;  %v1669_v37 = vmul.f32 %v3277_v33, %v1544_v46  ;;  %v1685_v41 = vmul.f32 %v3280_v43, %v1559_v44 }
 0x149   : > { %v1580_v36 = vrot.slane %v1573_v45, 1  ;;  %v1596_v26 = vrot.slane %v1589_v47, 1  ;;  %v1612_v11 = vrot.slane %v1605_v9, 2  ;;  %v1628_v8 = vrot.slane %v1621_v10, 2 }
 0x14a   : > { %v1644_v12 = vrot.slane %v1637_v62, 3  ;;  %v1676_v52 = vrot.slane %v1669_v37, 4  ;;  %v1701_v19 = vmul.f32 %v3314_v20, %v1544_v46  ;;  %v1692_v16 = vrot.slane %v1685_v41, 4 }
 0x14b   : > { %v1581_v30 = vsel %vm336_vm0, %v1578_v24, %v1580_v36  ;;  %v1597_v40 = vsel %vm336_vm0, %v1594_v3, %v1596_v26  ;;  %v1613_v28 = vsel %vm373_vm1, %v1610_v57, %v1612_v11  ;;  %v1629_v56 = vsel %vm373_vm1, %v1626_v54, %v1628_v8  ;;  %vm3510_vm0 = vmmov %vm3504_vm10 }
 0x14c   : > { %v1585_v49 = vadd.f32 %v1581_v30, %v1569_v6  ;;  %v1660_v24 = vrot.slane %v1653_v22, 3  ;;  %v1645_v38 = vsel %vm410_vm2, %v1642_v2, %v1644_v12  ;;  %v1717_v54 = vmul.f32 %v3317_v35, %v1559_v44  ;;  %vm3511_vm1 = vmmov %vm3510_vm0 }
 0x14d   : > { %v1677_v43 = vsel %vm3510_vm0, %v1674_v58, %v1676_v52  ;;  %v1708_v39 = vrot.slane %v1701_v19, 5  ;;  %v1693_v2 = vsel %vm3511_vm1, %v1690_v61, %v1692_v16 }
 0x14e   : > { %v1601_v50 = vadd.f32 %v1597_v40, %v1585_v49  ;;  %v1661_v33 = vsel %vm410_vm2, %v1658_v60, %v1660_v24  ;;  %v1724_v20 = vrot.slane %v1717_v54, 5  ;;  %vm3513_vm2 = vmmov %vm3506_vm5 }
 0x14f   : > { %v1709_v21 = vsel %vm3512_vm7, %v1706_v59, %v1708_v39 }
 0x150   : > { %v1617_v3 = vadd.f32 %v1613_v28, %v1601_v50  ;;  %v1725_v60 = vsel %vm3513_vm2, %v1722_v7, %v1724_v20 }
 0x152   : > { %v1633_v57 = vadd.f32 %v1629_v56, %v1617_v3 }
 0x154   : > { %v1649_v1 = vadd.f32 %v1645_v38, %v1633_v57 }
 0x156   : > { %v1665_v15 = vadd.f32 %v1661_v33, %v1649_v1 }
 0x158   : > { %v1681_v18 = vadd.f32 %v1677_v43, %v1665_v15 }
 0x15a   : > { %v1697_v53 = vadd.f32 %v1693_v2, %v1681_v18 }
 0x15c   : > { %v1713_v51 = vadd.f32 %v1709_v21, %v1697_v53 }
 0x15e   : > { %v1729_v35 = vadd.f32 %v1725_v60, %v1713_v51 }
 0x160   : > { %1732 = vst.msk [vmem:[%s3353_s30 + $0x8] sm:$0xff] %vm1730_vm8, %v1729_v35 }
 0x161 PF: > { %s13_s16 = sadd.s32 1, %s1998_s16   ;;  %s3514_s12 = smov %s1990_s14 }
 0x162   : > { %p10_p11 = scmp.ge.s32.totalorder %s13_s16, 6   ;;  %s3515_s13 = smov %s1994_s15 }
 0x163   : > { %s3516_s14 = smov %s3519_s17  ;;  %s3517_s15 = smov %s3523_s18 }
 0x164   :  { %12 = sbr.rel (!%p10_p11) target bundleno = 3 (0x3), region = 68 }

</bundles_post_ra>
